<compile_context>
chip_gen: v5e
topology: v5e:2x2
jax: 0.10.0
libtpu: 0.0.40
codegen_flags: <defaults>
</compile_context>

<pallas_src>
import math
import functools

import jax
import jax.numpy as jnp
from jax.experimental import pallas as pl
from jax.experimental.pallas import tpu as pltpu


# ---------------------------------------------------------------------------
# Kernel bodies
# ---------------------------------------------------------------------------
def _attend(enc, mask_add, wkq, wv, wo, num_heads, compute_dtype):
    """Single-(shared)-query multi-head attention for a tile of TB batch rows.

    enc      : (T, TB, E)   encoder states (keys == values), compute_dtype
    mask_add : (T, TB, H)   additive mask (-1e30 at padded positions) or None
    wkq      : (E, H)       Wk^T @ blockdiag(q * scale)  (fused key+query dot)
    wv, wo   : (E, E)       value / output projections (pre-transposed)
    returns  : (TB, E) f32
    """
    T, TB, E = enc.shape
    hd = E // num_heads

    enc_c = enc if enc.dtype == compute_dtype else enc.astype(compute_dtype)
    enc_flat = enc_c.reshape(T * TB, E)

    # Fused key projection + per-head query dot product (one MXU matmul).
    scores = jnp.dot(enc_flat, wkq,
                     preferred_element_type=jnp.float32).reshape(T, TB, num_heads)
    if mask_add is not None:
        scores = scores + mask_add

    # Numerically stable softmax over time (axis 0), all f32.
    scores = scores - jnp.max(scores, axis=0, keepdims=True)
    p = jnp.exp(scores)
    denom = jnp.sum(p, axis=0, keepdims=True)
    # TODO(synk): approx reciprocal (~2^-12 rel. err.) is fine for the forward
    # pass; use an exact divide if this ever feeds a backward pass.
    p = p * pl.reciprocal(denom, approx=True)              # (T, TB, H), f32

    # Pool-then-project: pool the encoder states with the per-head attention
    # weights first, then run the tiny value / output projections on the
    # pooled (TB, E) context.  The output projection is distributed per head:
    #   attn = sum_h (ctx_h @ Wv[:, h]) @ Wo[h, :]  ==  concat_h(o_h) @ Wo.
    attn = None
    for h in range(num_heads):
        sl = slice(h * hd, (h + 1) * hd)
        ctx_h = jnp.sum(p[:, :, h:h + 1] * enc, axis=0)    # (TB, E), f32 (VPU)
        o_h = jnp.dot(ctx_h.astype(compute_dtype), wv[:, sl],
                      preferred_element_type=jnp.float32)  # (TB, hd)
        contrib = jnp.dot(o_h.astype(compute_dtype), wo[sl, :],
                          preferred_element_type=jnp.float32)  # (TB, E)
        attn = contrib if attn is None else attn + contrib
    return attn


def _fused_kernel(num_heads, compute_dtype, has_mask_p, has_mask_q, *refs):
    """prior = W2 tanh(W1 attn(prior)+b1); post = Wp attn(post); Lp-padded."""
    prior_ref, post_ref = refs[-2], refs[-1]
    it = iter(refs[:-2])
    encp_ref = next(it)
    maskp = next(it)[...] if has_mask_p else None
    encq_ref = next(it)
    maskq = next(it)[...] if has_mask_q else None
    wkq_ref, wv_ref, wo_ref, w1_ref, b1_ref, w2_ref, wp_ref = it

    wkq, wv, wo = wkq_ref[...], wv_ref[...], wo_ref[...]
    attn_p = _attend(encp_ref[...], maskp, wkq, wv, wo, num_heads, compute_dtype)
    attn_q = _attend(encq_ref[...], maskq, wkq, wv, wo, num_heads, compute_dtype)

    hidden = jnp.tanh(jnp.dot(attn_p.astype(compute_dtype), w1_ref[...],
                              preferred_element_type=jnp.float32) + b1_ref[...])
    prior_ref[...] = jnp.dot(hidden.astype(compute_dtype), w2_ref[...],
                             preferred_element_type=jnp.float32)
    post_ref[...] = jnp.dot(attn_q.astype(compute_dtype), wp_ref[...],
                            preferred_element_type=jnp.float32)


def _prior_only_kernel(num_heads, compute_dtype, has_mask_p, *refs):
    prior_ref = refs[-1]
    it = iter(refs[:-1])
    encp_ref = next(it)
    maskp = next(it)[...] if has_mask_p else None
    wkq_ref, wv_ref, wo_ref, w1_ref, b1_ref, w2_ref = it

    attn_p = _attend(encp_ref[...], maskp, wkq_ref[...], wv_ref[...],
                     wo_ref[...], num_heads, compute_dtype)
    hidden = jnp.tanh(jnp.dot(attn_p.astype(compute_dtype), w1_ref[...],
                              preferred_element_type=jnp.float32) + b1_ref[...])
    prior_ref[...] = jnp.dot(hidden.astype(compute_dtype), w2_ref[...],
                             preferred_element_type=jnp.float32)


# ---------------------------------------------------------------------------
# Wrapper helpers
# ---------------------------------------------------------------------------
def _round_up(x, m):
    return ((x + m - 1) // m) * m


@functools.lru_cache(maxsize=1)
def _single_buffer_mode():
    """Probe whether pipeline_mode=pl.Buffered(1) is supported; else None."""
    try:
        mode = pl.Buffered(1)

        def k(x_ref, o_ref):
            o_ref[...] = x_ref[...] * 2.0

        fn = pl.pallas_call(
            k,
            out_shape=jax.ShapeDtypeStruct((16, 128), jnp.float32),
            grid=(2,),
            in_specs=[pl.BlockSpec((8, 128), lambda i: (0, 0),
                                   pipeline_mode=mode)],
            out_specs=pl.BlockSpec((8, 128), lambda i: (i, 0)))
        jax.jit(fn).lower(jnp.zeros((8, 128), jnp.float32)).compile()
        return mode
    except Exception:  # pragma: no cover - older jax / unsupported backend
        return None


def _batch_tile(B, bytes_per_row, sublane, enc_budget=12 * 1024 * 1024):
    """Batch tile TB (sublane-aligned or == B) and padded batch B_pad."""
    if B <= sublane:
        return B, B                       # full-dim block, no padding needed
    cap = (enc_budget // max(bytes_per_row, 1)) // sublane * sublane
    cap = max(sublane, min(128, cap))
    # Aim for >= 2 grid steps so both v7x TensorCores get work.
    half = _round_up(-(-B // 2), sublane)
    tb = max(sublane, min(cap, half))
    return tb, _round_up(B, tb)


def _pad_batch_axis1(x, B_pad):
    B = x.shape[1]
    if B == B_pad:
        return x
    return jnp.pad(x, ((0, 0), (0, B_pad - B), (0, 0)))


def _mask_tiles(mask_bt, T, B, B_pad, TB, num_heads):
    """(B, T) bool -> (ntiles, T, TB, H) additive f32 mask tiles.

    Laid out so the in-kernel add aligns directly with the (T, TB, H) score
    tensor (batch on sublanes, heads on lanes) -- no lane<->sublane relayout
    inside the kernel (same trick as segment-id handling in flash attention).
    """
    add = jnp.where(mask_bt, -1e30, 0.0).astype(jnp.float32)      # (B, T)
    if B_pad != B:
        add = jnp.pad(add, ((0, B_pad - B), (0, 0)))
    ntiles = B_pad // TB
    add = jnp.transpose(add.reshape(ntiles, TB, T), (0, 2, 1))    # (nt, T, TB)
    return jnp.broadcast_to(add[..., None], (ntiles, T, TB, num_heads))


def _derived_weights(params, num_heads, compute_dtype, l_pad):
    """Hoist the shared query projection, fuse it into the key weight, and
    zero-pad the output-column weights to lane-dense width l_pad."""
    query = params["query"].reshape(1, -1).astype(jnp.float32)    # (1, E)
    E = query.shape[-1]
    hd = E // num_heads
    scale = 1.0 / math.sqrt(hd)
    q_proj = (query @ params["wq_t"]) * scale                     # (1, E)

    head_of = jnp.arange(E) // hd
    onehot = (head_of[:, None] == jnp.arange(num_heads)[None, :]
              ).astype(jnp.float32)                               # (E, H)
    qbd = onehot * q_proj.reshape(E, 1)                           # (E, H)
    wkq = (params["wk_t"] @ qbd).astype(compute_dtype)            # (E, H)

    L = params["w2_t"].shape[1]
    pad = ((0, 0), (0, l_pad - L))
    cd = compute_dtype
    return dict(
        wkq=wkq,
        wv=params["wv_t"].astype(cd), wo=params["wo_t"].astype(cd),
        w1=params["w1_t"].astype(cd), b1=params["b1"].astype(jnp.float32),
        w2=jnp.pad(params["w2_t"], pad).astype(cd),
        wp=jnp.pad(params["wp_t"], pad).astype(cd))


# ---------------------------------------------------------------------------
# pallas_call wrapper
# ---------------------------------------------------------------------------
def latent_means_pallas(params, enc_prior, mask_prior, enc_post=None,
                        mask_post=None, *, num_heads,
                        compute_dtype=jnp.float32):
    """enc_*: (T, B, E) fairseq layout; mask_*: (B, T) bool or None.

    Returns (prior_mean (B, L), post_mean (B, L) or None).
    """
    Tp, B, E = enc_prior.shape
    assert E % num_heads == 0
    HID = params["w1_t"].shape[1]
    L = params["w2_t"].shape[1]
    Lp = _round_up(L, 128)
    Tq = enc_post.shape[0] if enc_post is not None else 0

    cd = jnp.dtype(compute_dtype)
    sublane = 8 if cd.itemsize >= 4 else 32 // cd.itemsize
    bytes_per_row = 2 * (Tp + Tq) * E * cd.itemsize   # double-buffered enc tiles
    TB, B_pad = _batch_tile(B, bytes_per_row, sublane)
    grid = (B_pad // TB,)

    w = _derived_weights(params, num_heads, compute_dtype, Lp)

    def enc_operand(enc):                 # cast in the wrapper (halves DMA bytes)
        e = enc if enc.dtype == cd else enc.astype(cd)
        return _pad_batch_axis1(e, B_pad)

    def enc_spec(T):
        return pl.BlockSpec((T, TB, E), lambda i: (0, i, 0))

    def mask_spec(T):
        # Leading tile dim squeezed; batch on sublanes, heads on lanes.
        return pl.BlockSpec((None, T, TB, num_heads), lambda i: (i, 0, 0, 0))

    sb_mode = _single_buffer_mode()

    def weight_spec(arr):                 # constant index -> single buffer
        nd = arr.ndim
        if sb_mode is None:
            return pl.BlockSpec(arr.shape, lambda i, _n=nd: (0,) * _n)
        return pl.BlockSpec(arr.shape, lambda i, _n=nd: (0,) * _n,
                            pipeline_mode=sb_mode)

    operands = [enc_operand(enc_prior)]
    in_specs = [enc_spec(Tp)]
    if mask_prior is not None:
        operands.append(_mask_tiles(mask_prior, Tp, B, B_pad, TB, num_heads))
        in_specs.append(mask_spec(Tp))
    if enc_post is not None:
        operands.append(enc_operand(enc_post))
        in_specs.append(enc_spec(Tq))
        if mask_post is not None:
            operands.append(_mask_tiles(mask_post, Tq, B, B_pad, TB, num_heads))
            in_specs.append(mask_spec(Tq))

    weight_names = ["wkq", "wv", "wo", "w1", "b1", "w2"]
    if enc_post is not None:
        weight_names.append("wp")
    for name in weight_names:
        operands.append(w[name])
        in_specs.append(weight_spec(w[name]))

    out_spec = pl.BlockSpec((TB, Lp), lambda i: (i, 0))
    cparams = pltpu.CompilerParams(
        dimension_semantics=("parallel",),
        vmem_limit_bytes=48 * 1024 * 1024)
    in_bytes = sum(int(a.size) * a.dtype.itemsize for a in operands)

    if enc_post is None:
        ce = pl.CostEstimate(
            flops=int(B_pad * (4 * Tp * E * num_heads + 4 * E * E
                               + 2 * E * HID + 2 * HID * Lp)),
            transcendentals=int(B_pad * (Tp * num_heads + HID)),
            bytes_accessed=int(in_bytes + B_pad * Lp * 4))
        prior_pad = pl.pallas_call(
            functools.partial(_prior_only_kernel, num_heads, compute_dtype,
                              mask_prior is not None),
            out_shape=jax.ShapeDtypeStruct((B_pad, Lp), jnp.float32),
            grid=grid, in_specs=in_specs, out_specs=out_spec,
            compiler_params=cparams, cost_estimate=ce,
        )(*operands)
        return prior_pad[:B, :L], None

    ce = pl.CostEstimate(
        flops=int(B_pad * (4 * (Tp + Tq) * E * num_heads + 8 * E * E
                           + 2 * E * HID + 2 * HID * Lp + 2 * E * Lp)),
        transcendentals=int(B_pad * ((Tp + Tq) * num_heads + HID)),
        bytes_accessed=int(in_bytes + 2 * B_pad * Lp * 4))
    prior_pad, post_pad = pl.pallas_call(
        functools.partial(_fused_kernel, num_heads, compute_dtype,
                          mask_prior is not None, mask_post is not None),
        out_shape=(jax.ShapeDtypeStruct((B_pad, Lp), jnp.float32),
                   jax.ShapeDtypeStruct((B_pad, Lp), jnp.float32)),
        grid=grid, in_specs=in_specs, out_specs=(out_spec, out_spec),
        compiler_params=cparams, cost_estimate=ce,
    )(*operands)
    return prior_pad[:B, :L], post_pad[:B, :L]


# ---------------------------------------------------------------------------
# Parameter init (deterministic, synthetic) + module forward
# ---------------------------------------------------------------------------
def init_params(key, encoder_embed_dim, latent_dim, hidden=256):
    E, L, H = encoder_embed_dim, latent_dim, hidden
    ks = jax.random.split(key, 6)

    def xavier(k, shape):
        fan_out, fan_in = shape
        std = math.sqrt(2.0 / (fan_in + fan_out))
        return jax.random.normal(k, shape, jnp.float32) * std

    in_proj = xavier(ks[0], (3 * E, E))          # MultiheadAttention.in_proj_weight
    wq, wk, wv = in_proj[:E], in_proj[E:2 * E], in_proj[2 * E:]
    wo = xavier(ks[1], (E, E))                   # out_proj.weight (no bias)
    w1 = xavier(ks[2], (H, E))                   # prior_net1.weight
    b1 = jnp.zeros((1, H), jnp.float32)          # prior_net1.bias
    w2 = xavier(ks[3], (L, H))                   # prior_net2.weight (no bias)
    wp = xavier(ks[4], (L, E))                   # post_net.weight   (no bias)
    query = xavier(ks[5], (1, E)).reshape(1, 1, E)   # xavier_normal_ query (1,1,E)

    return dict(
        wq_t=wq.T, wk_t=wk.T, wv_t=wv.T, wo_t=wo.T,
        w1_t=w1.T, b1=b1, w2_t=w2.T, wp_t=wp.T, query=query)


def tcvae_spacefusion_latent(params, prior_out, post_out, *, num_heads,
                             stddev, rng_key, use_posterior=None,
                             compute_dtype=jnp.float32):
    """Mirrors TCVAESpaceFusionLatent.forward.

    prior_out / post_out: {'encoder_out': (T, B, E) f32,
                           'encoder_padding_mask': (B, T) bool or None}
    """
    enc_p = prior_out["encoder_out"]                 # (T, B, E) fairseq layout
    Tp, B, E = enc_p.shape
    mask_p = prior_out["encoder_padding_mask"]

    if post_out is not None:
        prior_mean, post_mean = latent_means_pallas(
            params, enc_p, mask_p,
            post_out["encoder_out"], post_out["encoder_padding_mask"],
            num_heads=num_heads, compute_dtype=compute_dtype)
    else:
        prior_mean, post_mean = latent_means_pallas(
            params, enc_p, mask_p,
            num_heads=num_heads, compute_dtype=compute_dtype)

    L = prior_mean.shape[-1]
    k1, k2, k3 = jax.random.split(rng_key, 3)
    prior_std = jnp.full((B, L), stddev, jnp.float32)
    prior_z = prior_mean + stddev * jax.random.normal(k1, (B, L), jnp.float32)

    post_z = interp_z = None
    if post_out is not None:
        post_z = post_mean + stddev * jax.random.normal(k2, (B, L), jnp.float32)
        interp_w = jax.random.uniform(k3, (B, 1), jnp.float32)
        interp_z = interp_w * prior_z + (1.0 - interp_w) * post_z

    assert not use_posterior or post_out is not None
    if use_posterior is None:
        use_posterior = post_out is not None

    if use_posterior:
        return {"latent_out": post_z, "interp_out": interp_z,
                "prior_out": prior_z, "prior_mean": prior_mean,
                "prior_std": prior_std, "post_out": post_z,
                "post_mean": post_mean, "post_std": prior_std}
    return {"latent_out": prior_z, "prior_out": prior_z,
            "prior_mean": prior_mean, "prior_std": prior_std}


# ---------------------------------------------------------------------------
# Pure-JAX reference (correctness check of the deterministic pieces)
# ---------------------------------------------------------------------------
def _ref_mha(query, enc, mask, params, num_heads):
    B, T, E = enc.shape
    hd = E // num_heads
    scale = 1.0 / math.sqrt(hd)
    q = (query @ params["wq_t"]) * scale                      # (1, E)
    k = jnp.einsum("bte,ef->btf", enc, params["wk_t"])
    v = jnp.einsum("bte,ef->btf", enc, params["wv_t"])
    qh = q.reshape(1, num_heads, hd)
    kh = k.reshape(B, T, num_heads, hd)
    vh = v.reshape(B, T, num_heads, hd)
    scores = jnp.einsum("qhd,bthd->bhqt", qh, kh)             # (B, H, 1, T)
    scores = jnp.where(mask[:, None, None, :], -1e30, scores)
    p = jax.nn.softmax(scores, axis=-1)
    o = jnp.einsum("bhqt,bthd->bqhd", p, vh).reshape(B, 1, E)
    return (o @ params["wo_t"])[:, 0, :]


def _ref_means(params, enc_tbe, mask_bt, num_heads):
    enc = jnp.transpose(enc_tbe, (1, 0, 2))
    query = params["query"].reshape(1, -1)
    attn = _ref_mha(query, enc, mask_bt, params, num_heads)
    prior = jnp.tanh(attn @ params["w1_t"] + params["b1"]) @ params["w2_t"]
    post = attn @ params["wp_t"]
    return prior, post


# ---------------------------------------------------------------------------
if __name__ == "__main__":
    B, T, E, HEADS, L = 2, 8, 32, 4, 32      # encoder_embed_dim=32, heads=4,
    STDDEV = 0.1                             # decoder_embed_dim(latent)=32
    TOL = dict(atol=5e-3, rtol=5e-3)         # approx-reciprocal softmax denom

    root = jax.random.PRNGKey(0)
    kp, kd1, kd2, kr = jax.random.split(root, 4)

    params = init_params(kp, E, L, hidden=256)

    enc_prior = jax.random.normal(kd1, (T, B, E), jnp.float32)   # fairseq (T,B,E)
    enc_post = jax.random.normal(kd2, (T, B, E), jnp.float32)
    pad_mask = jnp.zeros((B, T), jnp.bool_).at[1, T - 2:].set(True)

    prior_in = {"encoder_out": enc_prior, "encoder_padding_mask": pad_mask}
    post_in = {"encoder_out": enc_post, "encoder_padding_mask": None}

    # --- fused prior+post path (f32, masked prior / unmasked post) ----------
    out = tcvae_spacefusion_latent(params, prior_in, post_in,
                                   num_heads=HEADS, stddev=STDDEV, rng_key=kr)
    jax.block_until_ready(out)

    prior_ref, _ = _ref_means(params, enc_prior, pad_mask, HEADS)
    _, post_ref = _ref_means(params, enc_post, jnp.zeros((B, T), jnp.bool_), HEADS)
    assert jnp.allclose(out["prior_mean"], prior_ref, **TOL)
    assert jnp.allclose(out["post_mean"], post_ref, **TOL)
    assert out["latent_out"].shape == (B, L)
    assert out["interp_out"].shape == (B, L)

    # --- prior-only path -----------------------------------------------------
    out_po = tcvae_spacefusion_latent(params, prior_in, None,
                                      num_heads=HEADS, stddev=STDDEV, rng_key=kr)
    jax.block_until_ready(out_po)
    assert jnp.allclose(out_po["prior_mean"], prior_ref, **TOL)
    assert out_po["latent_out"].shape == (B, L)

    # --- larger batch: exercises batch tiling (TB=8, B padded 10->16, grid=2)
    B2 = 10
    kb1, kb2 = jax.random.split(kd1)
    enc_prior2 = jax.random.normal(kb1, (T, B2, E), jnp.float32)
    enc_post2 = jax.random.normal(kb2, (T, B2, E), jnp.float32)
    pad2 = (jnp.zeros((B2, T), jnp.bool_)
            .at[0, T - 3:].set(True).at[7, T - 1:].set(True))
    out2 = tcvae_spacefusion_latent(
        params,
        {"encoder_out": enc_prior2, "encoder_padding_mask": pad2},
        {"encoder_out": enc_post2, "encoder_padding_mask": None},
        num_heads=HEADS, stddev=STDDEV, rng_key=kr)
    jax.block_until_ready(out2)
    prior_ref2, _ = _ref_means(params, enc_prior2, pad2, HEADS)
    _, post_ref2 = _ref_means(params, enc_post2, jnp.zeros((B2, T), jnp.bool_), HEADS)
    assert jnp.allclose(out2["prior_mean"], prior_ref2, **TOL)
    assert jnp.allclose(out2["post_mean"], post_ref2, **TOL)

    # --- bf16 matmul-operand path: enc/weights cast in the wrapper (halves
    # DMA bytes), f32 accumulation / softmax / tanh.  Loose tolerance.
    out_bf = tcvae_spacefusion_latent(params, prior_in, post_in,
                                      num_heads=HEADS, stddev=STDDEV,
                                      rng_key=kr, compute_dtype=jnp.bfloat16)
    jax.block_until_ready(out_bf)
    assert jnp.allclose(out_bf["prior_mean"], prior_ref, atol=1e-1, rtol=1e-1)
    assert jnp.allclose(out_bf["post_mean"], post_ref, atol=1e-1, rtol=1e-1)
    assert bool(jnp.all(jnp.isfinite(out_bf["prior_mean"])))
    assert bool(jnp.all(jnp.isfinite(out_bf["post_mean"])))

    print("KERNEL_OK")
</pallas_src>

<mosaic_0001>
module attributes {stable_mosaic.version = 11 : i64} {
  func.func @_fused_kernel(%arg0: i32, %arg1: memref<8x2x32xf32, #tpu.memory_space<vmem>>, %arg2: memref<1x8x2x4xf32, #tpu.memory_space<vmem>>, %arg3: memref<8x2x32xf32, #tpu.memory_space<vmem>>, %arg4: memref<32x4xf32, #tpu.memory_space<vmem>>, %arg5: memref<32x32xf32, #tpu.memory_space<vmem>>, %arg6: memref<32x32xf32, #tpu.memory_space<vmem>>, %arg7: memref<32x256xf32, #tpu.memory_space<vmem>>, %arg8: memref<1x256xf32, #tpu.memory_space<vmem>>, %arg9: memref<256x128xf32, #tpu.memory_space<vmem>>, %arg10: memref<32x128xf32, #tpu.memory_space<vmem>>, %arg11: memref<2x128xf32, #tpu.memory_space<vmem>>, %arg12: memref<2x128xf32, #tpu.memory_space<vmem>>) attributes {dimension_semantics = [#tpu.dimension_semantics<parallel>], iteration_bounds = array<i64: 1>, scalar_prefetch = 0 : i64, scratch_operands = 0 : i64, tpu.core_type = #tpu.core_type<tc>, window_params = [{transform_indices = @transform_0, window_bounds = array<i64: 8, 2, 32>}, {transform_indices = @transform_1, window_bounds = array<i64: 1, 8, 2, 4>}, {transform_indices = @transform_2, window_bounds = array<i64: 8, 2, 32>}, {pipeline_mode = #tpu.pipeline_mode<synchronous>, transform_indices = @transform_3, window_bounds = array<i64: 32, 4>}, {pipeline_mode = #tpu.pipeline_mode<synchronous>, transform_indices = @transform_4, window_bounds = array<i64: 32, 32>}, {pipeline_mode = #tpu.pipeline_mode<synchronous>, transform_indices = @transform_5, window_bounds = array<i64: 32, 32>}, {pipeline_mode = #tpu.pipeline_mode<synchronous>, transform_indices = @transform_6, window_bounds = array<i64: 32, 256>}, {pipeline_mode = #tpu.pipeline_mode<synchronous>, transform_indices = @transform_7, window_bounds = array<i64: 1, 256>}, {pipeline_mode = #tpu.pipeline_mode<synchronous>, transform_indices = @transform_8, window_bounds = array<i64: 256, 128>}, {pipeline_mode = #tpu.pipeline_mode<synchronous>, transform_indices = @transform_9, window_bounds = array<i64: 32, 128>}, {transform_indices = @transform_10, window_bounds = array<i64: 2, 128>}, {transform_indices = @transform_11, window_bounds = array<i64: 2, 128>}]} {
    %c0 = arith.constant 0 : index
    %c0_0 = arith.constant 0 : index
    %c0_1 = arith.constant 0 : index
    %c0_2 = arith.constant 0 : index
    %0 = vector.load %arg2[%c0, %c0_0, %c0_1, %c0_2] : memref<1x8x2x4xf32, #tpu.memory_space<vmem>>, vector<1x8x2x4xf32>
    %1 = vector.shape_cast %0 : vector<1x8x2x4xf32> to vector<8x2x4xf32>
    %c0_3 = arith.constant 0 : index
    %c0_4 = arith.constant 0 : index
    %2 = vector.load %arg4[%c0_3, %c0_4] : memref<32x4xf32, #tpu.memory_space<vmem>>, vector<32x4xf32>
    %c0_5 = arith.constant 0 : index
    %c0_6 = arith.constant 0 : index
    %3 = vector.load %arg5[%c0_5, %c0_6] : memref<32x32xf32, #tpu.memory_space<vmem>>, vector<32x32xf32>
    %c0_7 = arith.constant 0 : index
    %c0_8 = arith.constant 0 : index
    %4 = vector.load %arg6[%c0_7, %c0_8] : memref<32x32xf32, #tpu.memory_space<vmem>>, vector<32x32xf32>
    %c0_9 = arith.constant 0 : index
    %c0_10 = arith.constant 0 : index
    %c0_11 = arith.constant 0 : index
    %5 = vector.load %arg1[%c0_9, %c0_10, %c0_11] : memref<8x2x32xf32, #tpu.memory_space<vmem>>, vector<8x2x32xf32>
    %6 = vector.shape_cast %5 : vector<8x2x32xf32> to vector<16x32xf32>
    %cst = arith.constant dense<0.000000e+00> : vector<16x4xf32>
    %7 = tpu.matmul %6, %2, %cst {dimension_numbers = #tpu.dot_dimension_numbers<[1], [0], [0], [1], [0, 0, 1, 1], [], []>} : vector<16x32xf32>, vector<32x4xf32>, vector<16x4xf32> -> vector<16x4xf32>
    %8 = vector.shape_cast %7 : vector<16x4xf32> to vector<8x2x4xf32>
    %9 = arith.addf %8, %1 : vector<8x2x4xf32>
    %cst_12 = arith.constant dense<0xFF800000> : vector<2x4xf32>
    %10 = vector.multi_reduction <maximumf>, %9, %cst_12 [0] : vector<8x2x4xf32> to vector<2x4xf32>
    %11 = vector.shape_cast %10 : vector<2x4xf32> to vector<1x2x4xf32>
    %12 = vector.broadcast %11 : vector<1x2x4xf32> to vector<8x2x4xf32>
    %13 = arith.subf %9, %12 : vector<8x2x4xf32>
    %14 = math.exp %13 : vector<8x2x4xf32>
    %cst_13 = arith.constant dense<0.000000e+00> : vector<2x4xf32>
    %15 = vector.multi_reduction <add>, %14, %cst_13 [0] : vector<8x2x4xf32> to vector<2x4xf32>
    %16 = vector.shape_cast %15 : vector<2x4xf32> to vector<1x2x4xf32>
    %17 = tpu.reciprocal %16 {approx = true} : vector<1x2x4xf32> -> vector<1x2x4xf32>
    %18 = vector.broadcast %17 : vector<1x2x4xf32> to vector<8x2x4xf32>
    %19 = arith.mulf %14, %18 : vector<8x2x4xf32>
    %20 = vector.extract_strided_slice %19 {offsets = [0, 0, 0], sizes = [8, 2, 1], strides = [1, 1, 1]} : vector<8x2x4xf32> to vector<8x2x1xf32>
    %21 = vector.broadcast %20 : vector<8x2x1xf32> to vector<8x2x32xf32>
    %22 = arith.mulf %21, %5 : vector<8x2x32xf32>
    %cst_14 = arith.constant dense<0.000000e+00> : vector<2x32xf32>
    %23 = vector.multi_reduction <add>, %22, %cst_14 [0] : vector<8x2x32xf32> to vector<2x32xf32>
    %24 = vector.extract_strided_slice %3 {offsets = [0, 0], sizes = [32, 8], strides = [1, 1]} : vector<32x32xf32> to vector<32x8xf32>
    %cst_15 = arith.constant dense<0.000000e+00> : vector<2x8xf32>
    %25 = tpu.matmul %23, %24, %cst_15 {dimension_numbers = #tpu.dot_dimension_numbers<[1], [0], [0], [1], [0, 0, 1, 1], [], []>} : vector<2x32xf32>, vector<32x8xf32>, vector<2x8xf32> -> vector<2x8xf32>
    %26 = vector.extract_strided_slice %4 {offsets = [0, 0], sizes = [8, 32], strides = [1, 1]} : vector<32x32xf32> to vector<8x32xf32>
    %cst_16 = arith.constant dense<0.000000e+00> : vector<2x32xf32>
    %27 = tpu.matmul %25, %26, %cst_16 {dimension_numbers = #tpu.dot_dimension_numbers<[1], [0], [0], [1], [0, 0, 1, 1], [], []>} : vector<2x8xf32>, vector<8x32xf32>, vector<2x32xf32> -> vector<2x32xf32>
    %28 = vector.extract_strided_slice %19 {offsets = [0, 0, 1], sizes = [8, 2, 1], strides = [1, 1, 1]} : vector<8x2x4xf32> to vector<8x2x1xf32>
    %29 = vector.broadcast %28 : vector<8x2x1xf32> to vector<8x2x32xf32>
    %30 = arith.mulf %29, %5 : vector<8x2x32xf32>
    %cst_17 = arith.constant dense<0.000000e+00> : vector<2x32xf32>
    %31 = vector.multi_reduction <add>, %30, %cst_17 [0] : vector<8x2x32xf32> to vector<2x32xf32>
    %32 = vector.extract_strided_slice %3 {offsets = [0, 8], sizes = [32, 8], strides = [1, 1]} : vector<32x32xf32> to vector<32x8xf32>
    %cst_18 = arith.constant dense<0.000000e+00> : vector<2x8xf32>
    %33 = tpu.matmul %31, %32, %cst_18 {dimension_numbers = #tpu.dot_dimension_numbers<[1], [0], [0], [1], [0, 0, 1, 1], [], []>} : vector<2x32xf32>, vector<32x8xf32>, vector<2x8xf32> -> vector<2x8xf32>
    %34 = vector.extract_strided_slice %4 {offsets = [8, 0], sizes = [8, 32], strides = [1, 1]} : vector<32x32xf32> to vector<8x32xf32>
    %cst_19 = arith.constant dense<0.000000e+00> : vector<2x32xf32>
    %35 = tpu.matmul %33, %34, %cst_19 {dimension_numbers = #tpu.dot_dimension_numbers<[1], [0], [0], [1], [0, 0, 1, 1], [], []>} : vector<2x8xf32>, vector<8x32xf32>, vector<2x32xf32> -> vector<2x32xf32>
    %36 = arith.addf %27, %35 : vector<2x32xf32>
    %37 = vector.extract_strided_slice %19 {offsets = [0, 0, 2], sizes = [8, 2, 1], strides = [1, 1, 1]} : vector<8x2x4xf32> to vector<8x2x1xf32>
    %38 = vector.broadcast %37 : vector<8x2x1xf32> to vector<8x2x32xf32>
    %39 = arith.mulf %38, %5 : vector<8x2x32xf32>
    %cst_20 = arith.constant dense<0.000000e+00> : vector<2x32xf32>
    %40 = vector.multi_reduction <add>, %39, %cst_20 [0] : vector<8x2x32xf32> to vector<2x32xf32>
    %41 = vector.extract_strided_slice %3 {offsets = [0, 16], sizes = [32, 8], strides = [1, 1]} : vector<32x32xf32> to vector<32x8xf32>
    %cst_21 = arith.constant dense<0.000000e+00> : vector<2x8xf32>
    %42 = tpu.matmul %40, %41, %cst_21 {dimension_numbers = #tpu.dot_dimension_numbers<[1], [0], [0], [1], [0, 0, 1, 1], [], []>} : vector<2x32xf32>, vector<32x8xf32>, vector<2x8xf32> -> vector<2x8xf32>
    %43 = vector.extract_strided_slice %4 {offsets = [16, 0], sizes = [8, 32], strides = [1, 1]} : vector<32x32xf32> to vector<8x32xf32>
    %cst_22 = arith.constant dense<0.000000e+00> : vector<2x32xf32>
    %44 = tpu.matmul %42, %43, %cst_22 {dimension_numbers = #tpu.dot_dimension_numbers<[1], [0], [0], [1], [0, 0, 1, 1], [], []>} : vector<2x8xf32>, vector<8x32xf32>, vector<2x32xf32> -> vector<2x32xf32>
    %45 = arith.addf %36, %44 : vector<2x32xf32>
    %46 = vector.extract_strided_slice %19 {offsets = [0, 0, 3], sizes = [8, 2, 1], strides = [1, 1, 1]} : vector<8x2x4xf32> to vector<8x2x1xf32>
    %47 = vector.broadcast %46 : vector<8x2x1xf32> to vector<8x2x32xf32>
    %48 = arith.mulf %47, %5 : vector<8x2x32xf32>
    %cst_23 = arith.constant dense<0.000000e+00> : vector<2x32xf32>
    %49 = vector.multi_reduction <add>, %48, %cst_23 [0] : vector<8x2x32xf32> to vector<2x32xf32>
    %50 = vector.extract_strided_slice %3 {offsets = [0, 24], sizes = [32, 8], strides = [1, 1]} : vector<32x32xf32> to vector<32x8xf32>
    %cst_24 = arith.constant dense<0.000000e+00> : vector<2x8xf32>
    %51 = tpu.matmul %49, %50, %cst_24 {dimension_numbers = #tpu.dot_dimension_numbers<[1], [0], [0], [1], [0, 0, 1, 1], [], []>} : vector<2x32xf32>, vector<32x8xf32>, vector<2x8xf32> -> vector<2x8xf32>
    %52 = vector.extract_strided_slice %4 {offsets = [24, 0], sizes = [8, 32], strides = [1, 1]} : vector<32x32xf32> to vector<8x32xf32>
    %cst_25 = arith.constant dense<0.000000e+00> : vector<2x32xf32>
    %53 = tpu.matmul %51, %52, %cst_25 {dimension_numbers = #tpu.dot_dimension_numbers<[1], [0], [0], [1], [0, 0, 1, 1], [], []>} : vector<2x8xf32>, vector<8x32xf32>, vector<2x32xf32> -> vector<2x32xf32>
    %54 = arith.addf %45, %53 : vector<2x32xf32>
    %c0_26 = arith.constant 0 : index
    %c0_27 = arith.constant 0 : index
    %c0_28 = arith.constant 0 : index
    %55 = vector.load %arg3[%c0_26, %c0_27, %c0_28] : memref<8x2x32xf32, #tpu.memory_space<vmem>>, vector<8x2x32xf32>
    %56 = vector.shape_cast %55 : vector<8x2x32xf32> to vector<16x32xf32>
    %cst_29 = arith.constant dense<0.000000e+00> : vector<16x4xf32>
    %57 = tpu.matmul %56, %2, %cst_29 {dimension_numbers = #tpu.dot_dimension_numbers<[1], [0], [0], [1], [0, 0, 1, 1], [], []>} : vector<16x32xf32>, vector<32x4xf32>, vector<16x4xf32> -> vector<16x4xf32>
    %58 = vector.shape_cast %57 : vector<16x4xf32> to vector<8x2x4xf32>
    %cst_30 = arith.constant dense<0xFF800000> : vector<2x4xf32>
    %59 = vector.multi_reduction <maximumf>, %58, %cst_30 [0] : vector<8x2x4xf32> to vector<2x4xf32>
    %60 = vector.shape_cast %59 : vector<2x4xf32> to vector<1x2x4xf32>
    %61 = vector.broadcast %60 : vector<1x2x4xf32> to vector<8x2x4xf32>
    %62 = arith.subf %58, %61 : vector<8x2x4xf32>
    %63 = math.exp %62 : vector<8x2x4xf32>
    %cst_31 = arith.constant dense<0.000000e+00> : vector<2x4xf32>
    %64 = vector.multi_reduction <add>, %63, %cst_31 [0] : vector<8x2x4xf32> to vector<2x4xf32>
    %65 = vector.shape_cast %64 : vector<2x4xf32> to vector<1x2x4xf32>
    %66 = tpu.reciprocal %65 {approx = true} : vector<1x2x4xf32> -> vector<1x2x4xf32>
    %67 = vector.broadcast %66 : vector<1x2x4xf32> to vector<8x2x4xf32>
    %68 = arith.mulf %63, %67 : vector<8x2x4xf32>
    %69 = vector.extract_strided_slice %68 {offsets = [0, 0, 0], sizes = [8, 2, 1], strides = [1, 1, 1]} : vector<8x2x4xf32> to vector<8x2x1xf32>
    %70 = vector.broadcast %69 : vector<8x2x1xf32> to vector<8x2x32xf32>
    %71 = arith.mulf %70, %55 : vector<8x2x32xf32>
    %cst_32 = arith.constant dense<0.000000e+00> : vector<2x32xf32>
    %72 = vector.multi_reduction <add>, %71, %cst_32 [0] : vector<8x2x32xf32> to vector<2x32xf32>
    %73 = vector.extract_strided_slice %3 {offsets = [0, 0], sizes = [32, 8], strides = [1, 1]} : vector<32x32xf32> to vector<32x8xf32>
    %cst_33 = arith.constant dense<0.000000e+00> : vector<2x8xf32>
    %74 = tpu.matmul %72, %73, %cst_33 {dimension_numbers = #tpu.dot_dimension_numbers<[1], [0], [0], [1], [0, 0, 1, 1], [], []>} : vector<2x32xf32>, vector<32x8xf32>, vector<2x8xf32> -> vector<2x8xf32>
    %75 = vector.extract_strided_slice %4 {offsets = [0, 0], sizes = [8, 32], strides = [1, 1]} : vector<32x32xf32> to vector<8x32xf32>
    %cst_34 = arith.constant dense<0.000000e+00> : vector<2x32xf32>
    %76 = tpu.matmul %74, %75, %cst_34 {dimension_numbers = #tpu.dot_dimension_numbers<[1], [0], [0], [1], [0, 0, 1, 1], [], []>} : vector<2x8xf32>, vector<8x32xf32>, vector<2x32xf32> -> vector<2x32xf32>
    %77 = vector.extract_strided_slice %68 {offsets = [0, 0, 1], sizes = [8, 2, 1], strides = [1, 1, 1]} : vector<8x2x4xf32> to vector<8x2x1xf32>
    %78 = vector.broadcast %77 : vector<8x2x1xf32> to vector<8x2x32xf32>
    %79 = arith.mulf %78, %55 : vector<8x2x32xf32>
    %cst_35 = arith.constant dense<0.000000e+00> : vector<2x32xf32>
    %80 = vector.multi_reduction <add>, %79, %cst_35 [0] : vector<8x2x32xf32> to vector<2x32xf32>
    %81 = vector.extract_strided_slice %3 {offsets = [0, 8], sizes = [32, 8], strides = [1, 1]} : vector<32x32xf32> to vector<32x8xf32>
    %cst_36 = arith.constant dense<0.000000e+00> : vector<2x8xf32>
    %82 = tpu.matmul %80, %81, %cst_36 {dimension_numbers = #tpu.dot_dimension_numbers<[1], [0], [0], [1], [0, 0, 1, 1], [], []>} : vector<2x32xf32>, vector<32x8xf32>, vector<2x8xf32> -> vector<2x8xf32>
    %83 = vector.extract_strided_slice %4 {offsets = [8, 0], sizes = [8, 32], strides = [1, 1]} : vector<32x32xf32> to vector<8x32xf32>
    %cst_37 = arith.constant dense<0.000000e+00> : vector<2x32xf32>
    %84 = tpu.matmul %82, %83, %cst_37 {dimension_numbers = #tpu.dot_dimension_numbers<[1], [0], [0], [1], [0, 0, 1, 1], [], []>} : vector<2x8xf32>, vector<8x32xf32>, vector<2x32xf32> -> vector<2x32xf32>
    %85 = arith.addf %76, %84 : vector<2x32xf32>
    %86 = vector.extract_strided_slice %68 {offsets = [0, 0, 2], sizes = [8, 2, 1], strides = [1, 1, 1]} : vector<8x2x4xf32> to vector<8x2x1xf32>
    %87 = vector.broadcast %86 : vector<8x2x1xf32> to vector<8x2x32xf32>
    %88 = arith.mulf %87, %55 : vector<8x2x32xf32>
    %cst_38 = arith.constant dense<0.000000e+00> : vector<2x32xf32>
    %89 = vector.multi_reduction <add>, %88, %cst_38 [0] : vector<8x2x32xf32> to vector<2x32xf32>
    %90 = vector.extract_strided_slice %3 {offsets = [0, 16], sizes = [32, 8], strides = [1, 1]} : vector<32x32xf32> to vector<32x8xf32>
    %cst_39 = arith.constant dense<0.000000e+00> : vector<2x8xf32>
    %91 = tpu.matmul %89, %90, %cst_39 {dimension_numbers = #tpu.dot_dimension_numbers<[1], [0], [0], [1], [0, 0, 1, 1], [], []>} : vector<2x32xf32>, vector<32x8xf32>, vector<2x8xf32> -> vector<2x8xf32>
    %92 = vector.extract_strided_slice %4 {offsets = [16, 0], sizes = [8, 32], strides = [1, 1]} : vector<32x32xf32> to vector<8x32xf32>
    %cst_40 = arith.constant dense<0.000000e+00> : vector<2x32xf32>
    %93 = tpu.matmul %91, %92, %cst_40 {dimension_numbers = #tpu.dot_dimension_numbers<[1], [0], [0], [1], [0, 0, 1, 1], [], []>} : vector<2x8xf32>, vector<8x32xf32>, vector<2x32xf32> -> vector<2x32xf32>
    %94 = arith.addf %85, %93 : vector<2x32xf32>
    %95 = vector.extract_strided_slice %68 {offsets = [0, 0, 3], sizes = [8, 2, 1], strides = [1, 1, 1]} : vector<8x2x4xf32> to vector<8x2x1xf32>
    %96 = vector.broadcast %95 : vector<8x2x1xf32> to vector<8x2x32xf32>
    %97 = arith.mulf %96, %55 : vector<8x2x32xf32>
    %cst_41 = arith.constant dense<0.000000e+00> : vector<2x32xf32>
    %98 = vector.multi_reduction <add>, %97, %cst_41 [0] : vector<8x2x32xf32> to vector<2x32xf32>
    %99 = vector.extract_strided_slice %3 {offsets = [0, 24], sizes = [32, 8], strides = [1, 1]} : vector<32x32xf32> to vector<32x8xf32>
    %cst_42 = arith.constant dense<0.000000e+00> : vector<2x8xf32>
    %100 = tpu.matmul %98, %99, %cst_42 {dimension_numbers = #tpu.dot_dimension_numbers<[1], [0], [0], [1], [0, 0, 1, 1], [], []>} : vector<2x32xf32>, vector<32x8xf32>, vector<2x8xf32> -> vector<2x8xf32>
    %101 = vector.extract_strided_slice %4 {offsets = [24, 0], sizes = [8, 32], strides = [1, 1]} : vector<32x32xf32> to vector<8x32xf32>
    %cst_43 = arith.constant dense<0.000000e+00> : vector<2x32xf32>
    %102 = tpu.matmul %100, %101, %cst_43 {dimension_numbers = #tpu.dot_dimension_numbers<[1], [0], [0], [1], [0, 0, 1, 1], [], []>} : vector<2x8xf32>, vector<8x32xf32>, vector<2x32xf32> -> vector<2x32xf32>
    %103 = arith.addf %94, %102 : vector<2x32xf32>
    %c0_44 = arith.constant 0 : index
    %c0_45 = arith.constant 0 : index
    %104 = vector.load %arg7[%c0_44, %c0_45] : memref<32x256xf32, #tpu.memory_space<vmem>>, vector<32x256xf32>
    %cst_46 = arith.constant dense<0.000000e+00> : vector<2x256xf32>
    %105 = tpu.matmul %54, %104, %cst_46 {dimension_numbers = #tpu.dot_dimension_numbers<[1], [0], [0], [1], [0, 0, 1, 1], [], []>} : vector<2x32xf32>, vector<32x256xf32>, vector<2x256xf32> -> vector<2x256xf32>
    %c0_47 = arith.constant 0 : index
    %c0_48 = arith.constant 0 : index
    %106 = vector.load %arg8[%c0_47, %c0_48] : memref<1x256xf32, #tpu.memory_space<vmem>>, vector<1x256xf32>
    %107 = vector.broadcast %106 : vector<1x256xf32> to vector<2x256xf32>
    %108 = arith.addf %105, %107 : vector<2x256xf32>
    %109 = math.tanh %108 : vector<2x256xf32>
    %c0_49 = arith.constant 0 : index
    %c0_50 = arith.constant 0 : index
    %110 = vector.load %arg9[%c0_49, %c0_50] : memref<256x128xf32, #tpu.memory_space<vmem>>, vector<256x128xf32>
    %cst_51 = arith.constant dense<0.000000e+00> : vector<2x128xf32>
    %111 = tpu.matmul %109, %110, %cst_51 {dimension_numbers = #tpu.dot_dimension_numbers<[1], [0], [0], [1], [0, 0, 1, 1], [], []>} : vector<2x256xf32>, vector<256x128xf32>, vector<2x128xf32> -> vector<2x128xf32>
    %c0_52 = arith.constant 0 : index
    %c0_53 = arith.constant 0 : index
    %112 = vector.load %arg11[%c0_52, %c0_53] : memref<2x128xf32, #tpu.memory_space<vmem>>, vector<2x128xf32>
    tpu.vector_store %arg11[%c0_52, %c0_53], %111 {strides = array<i32>} : memref<2x128xf32, #tpu.memory_space<vmem>>, vector<2x128xf32>,
    %c0_54 = arith.constant 0 : index
    %c0_55 = arith.constant 0 : index
    %113 = vector.load %arg10[%c0_54, %c0_55] : memref<32x128xf32, #tpu.memory_space<vmem>>, vector<32x128xf32>
    %cst_56 = arith.constant dense<0.000000e+00> : vector<2x128xf32>
    %114 = tpu.matmul %103, %113, %cst_56 {dimension_numbers = #tpu.dot_dimension_numbers<[1], [0], [0], [1], [0, 0, 1, 1], [], []>} : vector<2x32xf32>, vector<32x128xf32>, vector<2x128xf32> -> vector<2x128xf32>
    %c0_57 = arith.constant 0 : index
    %c0_58 = arith.constant 0 : index
    %115 = vector.load %arg12[%c0_57, %c0_58] : memref<2x128xf32, #tpu.memory_space<vmem>>, vector<2x128xf32>
    tpu.vector_store %arg12[%c0_57, %c0_58], %114 {strides = array<i32>} : memref<2x128xf32, #tpu.memory_space<vmem>>, vector<2x128xf32>,
    return
  }
  func.func @transform_0(%arg0: i32) -> (i32, i32, i32) {
    %c0_i32 = arith.constant 0 : i32
    %c0_i32_0 = arith.constant 0 : i32
    %c0_i32_1 = arith.constant 0 : i32
    return %c0_i32, %arg0, %c0_i32_0 : i32, i32, i32
  }
  func.func @transform_1(%arg0: i32) -> (i32, i32, i32, i32) {
    %c0_i32 = arith.constant 0 : i32
    %c0_i32_0 = arith.constant 0 : i32
    %c0_i32_1 = arith.constant 0 : i32
    %c0_i32_2 = arith.constant 0 : i32
    return %arg0, %c0_i32, %c0_i32_0, %c0_i32_1 : i32, i32, i32, i32
  }
  func.func @transform_2(%arg0: i32) -> (i32, i32, i32) {
    %c0_i32 = arith.constant 0 : i32
    %c0_i32_0 = arith.constant 0 : i32
    %c0_i32_1 = arith.constant 0 : i32
    return %c0_i32, %arg0, %c0_i32_0 : i32, i32, i32
  }
  func.func @transform_3(%arg0: i32) -> (i32, i32) {
    %c0_i32 = arith.constant 0 : i32
    %c0_i32_0 = arith.constant 0 : i32
    %c0_i32_1 = arith.constant 0 : i32
    return %c0_i32, %c0_i32_0 : i32, i32
  }
  func.func @transform_4(%arg0: i32) -> (i32, i32) {
    %c0_i32 = arith.constant 0 : i32
    %c0_i32_0 = arith.constant 0 : i32
    %c0_i32_1 = arith.constant 0 : i32
    return %c0_i32, %c0_i32_0 : i32, i32
  }
  func.func @transform_5(%arg0: i32) -> (i32, i32) {
    %c0_i32 = arith.constant 0 : i32
    %c0_i32_0 = arith.constant 0 : i32
    %c0_i32_1 = arith.constant 0 : i32
    return %c0_i32, %c0_i32_0 : i32, i32
  }
  func.func @transform_6(%arg0: i32) -> (i32, i32) {
    %c0_i32 = arith.constant 0 : i32
    %c0_i32_0 = arith.constant 0 : i32
    %c0_i32_1 = arith.constant 0 : i32
    return %c0_i32, %c0_i32_0 : i32, i32
  }
  func.func @transform_7(%arg0: i32) -> (i32, i32) {
    %c0_i32 = arith.constant 0 : i32
    %c0_i32_0 = arith.constant 0 : i32
    %c0_i32_1 = arith.constant 0 : i32
    return %c0_i32, %c0_i32_0 : i32, i32
  }
  func.func @transform_8(%arg0: i32) -> (i32, i32) {
    %c0_i32 = arith.constant 0 : i32
    %c0_i32_0 = arith.constant 0 : i32
    %c0_i32_1 = arith.constant 0 : i32
    return %c0_i32, %c0_i32_0 : i32, i32
  }
  func.func @transform_9(%arg0: i32) -> (i32, i32) {
    %c0_i32 = arith.constant 0 : i32
    %c0_i32_0 = arith.constant 0 : i32
    %c0_i32_1 = arith.constant 0 : i32
    return %c0_i32, %c0_i32_0 : i32, i32
  }
  func.func @transform_10(%arg0: i32) -> (i32, i32) {
    %c0_i32 = arith.constant 0 : i32
    %c0_i32_0 = arith.constant 0 : i32
    return %arg0, %c0_i32 : i32, i32
  }
  func.func @transform_11(%arg0: i32) -> (i32, i32) {
    %c0_i32 = arith.constant 0 : i32
    %c0_i32_0 = arith.constant 0 : i32
    return %arg0, %c0_i32 : i32, i32
  }
}

</mosaic_0001>

<bundles_post_ra>
// kernel: tpu_custom_call.1
= control target key start
LH: loop header
LB: loop body
LE: loop exit
PB: predicated region body
PF: predicated region fallthrough
CT: control target
= control target key end

     0   :  { %17 = vsyncpa [#allocation3], 0  ;;  %s2721_s0 = inlined_call_operand.hbm [shape: f32[8,2,32], index: 0, kind: input, shape index: {}]   ;;  %s2722_s1 = inlined_call_operand.vmem [shape: f32[1,8,2,4], index: 1, kind: input, shape index: {}]   ;;  %s2723_s2 = inlined_call_operand.hbm [shape: f32[8,2,32], index: 2, kind: input, shape index: {}]   ;;  %s2724_s3 = inlined_call_operand.vmem [shape: f32[32,4], index: 3, kind: input, shape index: {}]   ;;  %s2725_s4 = inlined_call_operand.hbm [shape: f32[32,32], index: 4, kind: input, shape index: {}]   ;;  %s2726_s5 = inlined_call_operand.hbm [shape: f32[32,32], index: 5, kind: input, shape index: {}]   ;;  %s2727_s6 = inlined_call_operand.vmem [shape: f32[32,256], index: 6, kind: input, shape index: {}]   ;;  %s2728_s7 = inlined_call_operand.vmem [shape: f32[1,256], index: 7, kind: input, shape index: {}]   ;;  %s2729_s8 = inlined_call_operand.hbm [shape: f32[256,128], index: 8, kind: input, shape index: {}]   ;;  %s2730_s9 = inlined_call_operand.hbm [shape: f32[32,128], index: 9, kind: input, shape index: {}]   ;;  %s2731_s10 = inlined_call_operand.hbm [shape: f32[2,128], index: 10, kind: output, shape index: {0}]   ;;  %s2732_s11 = inlined_call_operand.hbm [shape: f32[2,128], index: 11, kind: output, shape index: {1}]  }
   0x1   :  { %18 = vsyncpa [#allocation6], 0 }
   0x2   :  { %19 = vsyncpa [#allocation9], 0 }
   0x3   :  { %20 = vsyncpa [#allocation12], 0 }
   0x4   :  { %21 = vsyncpa [#allocation4], 0 }
   0x5   :  { %22 = vsyncpa [#allocation15], 0  ;;  %s42_s19 = sshll.u32 %s2723_s2, 4  ;;  %s2099_s20 = smov [#allocation5]   ;;  %s43_s19 = int_to_ptr.hbm [resolvable:$true] %s42_s19 }
   0x6   :  { %s44_s21 = sshll.u32 %s2099_s20, 4  ;;  %s2100_s22 = smov 32   ;;  %s45_s21 = int_to_ptr.vmem [resolvable:$true] %s44_s21 }
   0x7   :  { %s2101_s23 = smov 2   ;;  %s70_s26 = sshll.u32 %s2726_s5, 4  ;;  %s71_s26 = int_to_ptr.hbm [resolvable:$true] %s70_s26 }
   0x8   :  { %50 = dma.hbm_to_vmem [thread:$0]  %s43_s19, 256, %s45_s21, [#allocation6], %s2100_s22, %s2100_s22, %s2101_s23  }
   0x9   :  { %s2102_s27 = smov [#allocation8]   ;;  %s27_s12 = sshll.u32 %s2721_s0, 4  ;;  %s28_s12 = int_to_ptr.hbm [resolvable:$true] %s27_s12 }
   0xa   :  { %s72_s28 = sshll.u32 %s2102_s27, 4  ;;  %s2103_s2 = smov 128   ;;  %s73_s28 = int_to_ptr.vmem [resolvable:$true] %s72_s28 }
   0xb   :  { %s2104_s13 = smov 8   ;;  %s57_s16 = sshll.u32 %s2725_s4, 4  ;;  %s58_s16 = int_to_ptr.hbm [resolvable:$true] %s57_s16 }
   0xc   :  { %78 = dma.hbm_to_vmem [thread:$0]  %s71_s26, 512, %s73_s28, [#allocation9], %s2103_s2, %s2103_s2, %s2104_s13  }
   0xd   :  { %s2105_s17 = smov [#allocation2]   ;;  %s2106_s5 = smov [#allocation7]  }
   0xe   :  { %s29_s18 = sshll.u32 %s2105_s17, 4  ;;  %s59_s19 = sshll.u32 %s2106_s5, 4  ;;  %s30_s18 = int_to_ptr.vmem [resolvable:$true] %s29_s18  ;;  %s60_s19 = int_to_ptr.vmem [resolvable:$true] %s59_s19 }
   0xf   :  { %35 = dma.hbm_to_vmem [thread:$0]  %s28_s12, 256, %s30_s18, [#allocation3], %s2100_s22, %s2100_s22, %s2101_s23  }
  0x10   :  { %s87_s0 = sshll.u32 %s2729_s8, 4  ;;  %s100_s26 = sshll.u32 %s2730_s9, 4  ;;  %s88_s0 = int_to_ptr.hbm [resolvable:$true] %s87_s0  ;;  %s101_s26 = int_to_ptr.hbm [resolvable:$true] %s100_s26 }
  0x11   :  { %65 = dma.hbm_to_vmem [thread:$0]  %s58_s16, 512, %s60_s19, [#allocation6], %s2103_s2, %s2103_s2, %s2104_s13  }
  0x12   :  { %s2107_s27 = smov [#allocation10]   ;;  %s2108_s28 = smov [#allocation11]  }
  0x13   :  { %s89_s4 = sshll.u32 %s2107_s27, 4  ;;  %s102_s22 = sshll.u32 %s2108_s28, 4  ;;  %s90_s4 = int_to_ptr.vmem [resolvable:$true] %s89_s4  ;;  %s103_s22 = int_to_ptr.vmem [resolvable:$true] %s102_s22 }
  0x14   :  { %95 = dma.hbm_to_vmem [thread:$0]  %s88_s0, 4096, %s90_s4, [#allocation9], %s2103_s2, %s2103_s2, %s2104_s13  }
  0x15   :  { %108 = dma.hbm_to_vmem [thread:$0]  %s101_s26, 512, %s103_s22, [#allocation12], %s2103_s2, %s2103_s2, %s2104_s13  }
  0x16   :  { %2087 = dma.done.wait [#allocation3], 256  }
  0x17   :  { %2088 = vsyncadd [#allocation3], 4294967040 }
  0x18   :  { %2089 = dma.done.wait [#allocation6], 768  }
  0x19   :  { %2090 = vsyncadd [#allocation6], 4294966528 }
  0x1a   :  { %2091 = dma.done.wait [#allocation9], 4608  }
  0x1b   :  { %2092 = vsyncadd [#allocation9], 4294962688 }
  0x1c   :  { %2093 = dma.done.wait [#allocation12], 512  }
  0x1d   :  { %2094 = vsyncadd [#allocation12], 4294966784  ;;  %v2200_v0 = vld [vmem:[%s2724_s3 + $0x18] sm:$0xff]  ;;  %v2205_v1 = vld [vmem:[%s2724_s3 + $0x10] sm:$0xff]  ;;  %vm186_vm0 = vcmask 261120   ;;  %vm236_vm1 = vcmask 25600  }
  0x1e   :  { %203 = vmatpush.msra.mxu0 %v2200_v0  ;;  %v2211_v2 = vld [vmem:[%s2724_s3 + $0x8] sm:$0xff]  ;;  %v2227_v7 = vld [vmem:[%s2724_s3] sm:$0xff]  ;;  %v2232_v8 = vld [vmem:[#allocation2 + $0x8] sm:$0x3]  ;;  %v2735_v60 = vmov 0   ;;  %s2113_s28 = smov 104  }
  0x1f   :  { %v2213_v3 = vld [vmem:[#allocation2] sm:$0x3]  ;;  %v2215_v4 = vld [vmem:[#allocation2 + $0x2] sm:$0x3]  ;;  %v2217_v5 = vld [vmem:[#allocation2 + $0x4] sm:$0x3]  ;;  %1804 = vset.pattern.permute.xlu2 %v2735_v60  ;;  %1803 = vset.pattern.permute.xlu1 %v2735_v60 }
  0x20   :  { %v2219_v6 = vld [vmem:[#allocation2 + $0x6] sm:$0x3]  ;;  %169 = vst [vmem:[#allocation1] ss:$4 sm:$0xff] %v2213_v3  ;;  %204 = vmatpush.msra.mxu0 %v2205_v1  ;;  %v2234_v9 = vld [vmem:[#allocation2 + $0xa] sm:$0x3]  ;;  %1802 = vset.pattern.permute.xlu0 %v2735_v60 }
  0x21   :  { %171 = vst [vmem:[#allocation1 + $0x1] ss:$4 sm:$0xff] %v2215_v4  ;;  %v2236_v10 = vld [vmem:[#allocation2 + $0xc] sm:$0x3]  ;;  %v2238_v11 = vld [vmem:[#allocation2 + $0xe] sm:$0x3] }
  0x22   :  { %173 = vst [vmem:[#allocation1 + $0x2] ss:$4 sm:$0xff] %v2217_v5  ;;  %205 = vmatpush.msra.mxu0 %v2211_v2  ;;  %v2245_v12 = vld [vmem:[#allocation5] sm:$0x3]  ;;  %v2247_v13 = vld [vmem:[#allocation5 + $0x2] sm:$0x3] }
  0x23   :  { %175 = vst [vmem:[#allocation1 + $0x3] ss:$4 sm:$0xff] %v2219_v6  ;;  %v2249_v15 = vld [vmem:[#allocation5 + $0x4] sm:$0x3]  ;;  %v2252_v16 = vld [vmem:[#allocation5 + $0x6] sm:$0x3] }
  0x24   :  { %177 = vst [vmem:[#allocation1 + $0x20] ss:$4 sm:$0xff] %v2232_v8  ;;  %206 = vmatpush.msra.mxu0 %v2227_v7  ;;  %v2256_v17 = vld [vmem:[#allocation5 + $0x8] sm:$0x3]  ;;  %v2259_v18 = vld [vmem:[#allocation5 + $0xa] sm:$0x3] }
  0x25   :  { %179 = vst [vmem:[#allocation1 + $0x21] ss:$4 sm:$0xff] %v2234_v9  ;;  %v2261_v19 = vld [vmem:[#allocation5 + $0xc] sm:$0x3]  ;;  %v2264_v21 = vld [vmem:[#allocation5 + $0xe] sm:$0x3] }
  0x26   :  { %181 = vst [vmem:[#allocation1 + $0x22] ss:$4 sm:$0xff] %v2236_v10  ;;  %v133_v23 = vld [vmem:[%s2722_s1] sm:$0x3]  ;;  %v134_v27 = vld [vmem:[%s2722_s1 + $0x2] sm:$0x3] }
  0x27   :  { %183 = vst [vmem:[#allocation1 + $0x23] ss:$4 sm:$0xff] %v2238_v11  ;;  %v135_v28 = vld [vmem:[%s2722_s1 + $0x4] sm:$0x3]  ;;  %v136_v29 = vld [vmem:[%s2722_s1 + $0x6] sm:$0x3] }
  0x28   :  { %v137_v30 = vld [vmem:[%s2722_s1 + $0x8] sm:$0x3]  ;;  %v138_v35 = vld [vmem:[%s2722_s1 + $0xa] sm:$0x3]  ;;  %v139_v36 = vld [vmem:[%s2722_s1 + $0xc] sm:$0x3] }
  0x29   :  { %v140_v37 = vld [vmem:[%s2722_s1 + $0xe] sm:$0x3]  ;;  %s2111_s1 = smov 112   ;;  %s2115_s22 = smov 120   ;;  %vm380_vm2 = vcmask 254976   ;;  %vm545_vm3 = vcmask 64512  }
  0x2a   :  { %v184_v14 = vld.sshfl [vmem:[#allocation1] sm:$0xff pattern:$0x73625140]  ;;  %s1730_s25 = sshll.u32 %s2731_s10, 4  ;;  %s2118_s26 = smov [#allocation14]   ;;  %s1731_s25 = int_to_ptr.hbm [resolvable:$true] %s1730_s25 }
  0x2b   :  { %1759 = vmatmul.msk.f32.vlgmr.msra.gmra.mxu0 %vm186_vm0, %v184_v14  ;;  %900 = vst [vmem:[#allocation1] ss:$4 sm:$0xff] %v2245_v12  ;;  %s1739_s27 = sshll.u32 %s2118_s26, 4  ;;  %s1740_s27 = int_to_ptr.vmem [resolvable:$true] %s1739_s27 }
  0x2c   :  { %902 = vst [vmem:[#allocation1 + $0x1] ss:$4 sm:$0xff] %v2247_v13 }
  0x2d   :  { %904 = vst [vmem:[#allocation1 + $0x2] ss:$4 sm:$0xff] %v2249_v15 }
  0x2e   :  { %906 = vst [vmem:[#allocation1 + $0x3] ss:$4 sm:$0xff] %v2252_v16  ;;  %v185_v20 = vld.sshfl [vmem:[#allocation1 + $0x20] sm:$0xff pattern:$0x73625140] }
  0x2f   :  { %908 = vst [vmem:[#allocation1 + $0x20] ss:$4 sm:$0xff] %v2256_v17 }
  0x30   :  { %910 = vst [vmem:[#allocation1 + $0x21] ss:$4 sm:$0xff] %v2259_v18 }
  0x31   :  { %912 = vst [vmem:[#allocation1 + $0x22] ss:$4 sm:$0xff] %v2261_v19 }
  0x32   :  { %914 = vst [vmem:[#allocation1 + $0x23] ss:$4 sm:$0xff] %v2264_v21 }
  0x33   :  { %1760 = vmatmul.msk.f32.gmra.mxu0 %vm186_vm0, %v185_v20 }
  0xa8   :  { %v208_v22 = vpop.f32.mrf.mxu0 }
  0xa9   :  { %v216_v24 = vrot.slane %v208_v22, 2  ;;  %v217_v25 = vrot.slane %v208_v22, 4  ;;  %v218_v26 = vrot.slane %v208_v22, 6  ;;  %v228_v31 = vadd.f32 %v208_v22, %v133_v23 }
  0xab   :  { %v229_v32 = vadd.f32 %v216_v24, %v134_v27  ;;  %v230_v33 = vadd.f32 %v217_v25, %v135_v28  ;;  %v231_v34 = vadd.f32 %v218_v26, %v136_v29  ;;  %v237_v47 = vsel %vm236_vm1, %v228_v31, -inf }
  0xad   :  { %v238_v48 = vsel %vm236_vm1, %v229_v32, -inf  ;;  %v239_v49 = vsel %vm236_vm1, %v230_v33, -inf  ;;  %v240_v50 = vsel %vm236_vm1, %v231_v34, -inf }
  0xb0   :  { %v211_v38 = vpop.f32.mrf.mxu0 }
  0xb1   :  { %v219_v39 = vrot.slane %v211_v38, 2  ;;  %v220_v40 = vrot.slane %v211_v38, 4  ;;  %v221_v41 = vrot.slane %v211_v38, 6  ;;  %v232_v42 = vadd.f32 %v211_v38, %v137_v30 }
  0xb3   :  { %v233_v43 = vadd.f32 %v219_v39, %v138_v35  ;;  %v234_v44 = vadd.f32 %v220_v40, %v139_v36  ;;  %v235_v45 = vadd.f32 %v221_v41, %v140_v37  ;;  %v241_v46 = vsel %vm236_vm1, %v232_v42, -inf }
  0xb4   :  { %v242_v54 = vmax.f32 %v237_v47, %v241_v46 }
  0xb5   :  { %v243_v51 = vsel %vm236_vm1, %v233_v43, -inf  ;;  %v245_v52 = vsel %vm236_vm1, %v234_v44, -inf  ;;  %v247_v53 = vsel %vm236_vm1, %v235_v45, -inf }
  0xb6   :  { %v244_v55 = vmax.f32 %v238_v48, %v243_v51  ;;  %v246_v56 = vmax.f32 %v239_v49, %v245_v52  ;;  %v248_v57 = vmax.f32 %v240_v50, %v247_v53 }
  0xb8   :  { %v249_v58 = vmax.f32 %v242_v54, %v244_v55  ;;  %v250_v59 = vmax.f32 %v246_v56, %v248_v57 }
  0xba   :  { %v251_v61 = vmax.f32 %v249_v58, %v250_v59 }
  0xbc   :  { %v252_v62 = vsub.f32 %v228_v31, %v251_v61  ;;  %v253_v63 = vsub.f32 %v229_v32, %v251_v61  ;;  %v254_v14 = vsub.f32 %v230_v33, %v251_v61  ;;  %v255_v20 = vsub.f32 %v231_v34, %v251_v61 }
  0xbd   :  { %v256_v22 = vsub.f32 %v232_v42, %v251_v61  ;;  %v257_v26 = vsub.f32 %v233_v43, %v251_v61  ;;  %v258_v28 = vsub.f32 %v234_v44, %v251_v61  ;;  %v259_v30 = vsub.f32 %v235_v45, %v251_v61 }
  0xbe   :  { %v260_v23 = vmul.f32 1.442695, %v252_v62  ;;  %v262_v24 = vmul.f32 1.442695, %v253_v63  ;;  %v264_v25 = vmul.f32 1.442695, %v254_v14 }
  0xbf   :  { %v266_v27 = vmul.f32 1.442695, %v255_v20  ;;  %v268_v29 = vmul.f32 1.442695, %v256_v22  ;;  %v270_v35 = vmul.f32 1.442695, %v257_v26 }
  0xc0   :  { %1855 = vpow2.f32 %v260_v23  ;;  %v272_v36 = vmul.f32 1.442695, %v258_v28  ;;  %v274_v33 = vmul.f32 1.442695, %v259_v30  ;;  %v2317_v62 = vld [vmem:[#allocation7 + $0x18] sm:$0xff]  ;;  %v2320_v63 = vld [vmem:[#allocation7 + $0x10] sm:$0xff] }
  0xc1   :  { %1857 = vpow2.f32 %v262_v24  ;;  %411 = vmatpush.msra.mxu1 %v2317_v62  ;;  %v2323_v23 = vld [vmem:[#allocation7 + $0x8] sm:$0xff]  ;;  %v2326_v24 = vld [vmem:[#allocation7] sm:$0xff]  ;;  %v2737_v26 = vmov 2   ;;  %v1808_v28 = vpack.i.bf16 %v2320_v63, %v2317_v62  ;;  %v2112_v30 = vmov 1  }
  0xc2   :  { %1859 = vpow2.f32 %v264_v25 }
  0xc3   :  { %1861 = vpow2.f32 %v266_v27  ;;  %412 = vmatpush.msra.mxu1 %v2320_v63 }
  0xc4   :  { %1863 = vpow2.f32 %v268_v29  ;;  %v1813_v29 = vpack.i.bf16 %v2326_v24, %v2323_v23 }
  0xc5   :  { %1865 = vpow2.f32 %v270_v35  ;;  %413 = vmatpush.msra.mxu1 %v2323_v23  ;;  %v2733_v35 = vmov 3  }
  0xc6   :  { %v1856_v31 = vpop.eup %1855  ;;  %1867 = vpow2.f32 %v272_v36 }
  0xc7   :  { %v1858_v32 = vpop.eup %1857  ;;  %v276_v34 = vsel %vm236_vm1, %v1856_v31, 0.0  ;;  %1869 = vpow2.f32 %v274_v33  ;;  %414 = vmatpush.msra.mxu1 %v2326_v24  ;;  %v2116_v33 = vmov 269488144  }
  0xc8   :  { %v1860_v37 = vpop.eup %1859  ;;  %v277_v38 = vsel %vm236_vm1, %v1858_v32, 0.0 }
  0xc9   :  { %v1862_v39 = vpop.eup %1861  ;;  %v278_v40 = vadd.f32 %v277_v38, %v276_v34  ;;  %v279_v41 = vsel %vm236_vm1, %v1860_v37, 0.0  ;;  %v306_v34 = vunpack.c.l.s4 %v2116_v33 }
  0xca   :  { %v1864_v42 = vpop.eup %1863  ;;  %v281_v44 = vsel %vm236_vm1, %v1862_v39, 0.0 }
  0xcb   :  { %v280_v43 = vadd.f32 %v279_v41, %v278_v40  ;;  %v1866_v45 = vpop.eup %1865  ;;  %v283_v47 = vsel %vm236_vm1, %v1864_v42, 0.0  ;;  %v2343_v40 = vunpack.c.0.s8 %v306_v34 }
  0xcc   :  { %v1868_v48 = vpop.eup %1867  ;;  %v285_v50 = vsel %vm236_vm1, %v1866_v45, 0.0 }
  0xcd   :  { %v282_v46 = vadd.f32 %v281_v44, %v280_v43  ;;  %v1870_v51 = vpop.eup %1869  ;;  %v287_v53 = vsel %vm236_vm1, %v1868_v48, 0.0 }
  0xce   :  { %v289_v55 = vsel %vm236_vm1, %v1870_v51, 0.0 }
  0xcf   :  { %v284_v49 = vadd.f32 %v283_v47, %v282_v46 }
  0xd1   :  { %v286_v52 = vadd.f32 %v285_v50, %v284_v49 }
  0xd3   :  { %v288_v54 = vadd.f32 %v287_v53, %v286_v52 }
  0xd5   :  { %v290_v56 = vadd.f32 %v289_v55, %v288_v54 }
  0xd7   :  { %1871 = vrcp.f32 %v290_v56 }
  0xdd   :  { %v1872_v57 = vpop.eup %1871 }
  0xde   :  { %v2314_v58 = vmul.f32 %v1872_v57, %v1864_v42  ;;  %v294_v59 = vmul.f32 %v1872_v57, %v1860_v37  ;;  %v292_v61 = vmul.f32 %v1872_v57, %v1856_v31  ;;  %v297_v14 = vmul.f32 %v1872_v57, %v1866_v45 }
  0xdf   :  { %v295_v20 = vmul.f32 %v1872_v57, %v1862_v39  ;;  %v293_v22 = vmul.f32 %v1872_v57, %v1858_v32  ;;  %v298_v25 = vmul.f32 %v1872_v57, %v1868_v48  ;;  %v299_v27 = vmul.f32 %v1872_v57, %v1870_v51 }
  0xe0   :  { %338 = vperm.xlu2 %1804, %v2314_v58   ;;  %320 = vperm.xlu1 %1803, %v294_v59  }
  0xe1   :  { %302 = vperm.xlu0 %1802, %v292_v61  }
  0xe8   :  { %347 = vperm.xlu2 %1804, %v297_v14   ;;  %329 = vperm.xlu1 %1803, %v295_v20  }
  0xe9   :  { %311 = vperm.xlu0 %1802, %v293_v22  }
  0xf0   :  { %356 = vperm.xlu2 %1804, %v298_v25   ;;  %1806 = vset.pattern.permute.xlu1 %v2737_v26 }
  0xf1   :  { %1805 = vset.pattern.permute.xlu0 %v2737_v26  ;;  %601 = vperm.xlu1 %1806, %v293_v22  }
  0xf2   :  { %593 = vperm.xlu0 %1805, %v292_v61  }
  0xf8   :  { %365 = vperm.xlu2 %1804, %v299_v27  }
  0xf9   :  { %609 = vperm.xlu1 %1806, %v294_v59  }
  0xfa   :  { %617 = vperm.xlu0 %1805, %v295_v20  }
 0x100   :  { %1807 = vset.pattern.permute.xlu2 %v2737_v26 }
 0x101   :  { %633 = vperm.xlu2 %1807, %v297_v14   ;;  %625 = vperm.xlu1 %1806, %v2314_v58  }
 0x102   :  { %641 = vperm.xlu0 %1805, %v298_v25  }
 0x109   :  { %1809 = vrot.lane.b32.xlu2 %v1808_v28, %s2111_s1  ;;  %649 = vperm.xlu1 %1806, %v299_v27  }
 0x10a   :  { %1814 = vrot.lane.b32.xlu0 %v1813_v29, %s2111_s1  ;;  %1819 = vset.pattern.permute.xlu2 %v2112_v30 }
 0x10b   :  { %1820 = vset.pattern.permute.xlu0 %v2112_v30 }
 0x111   :  { %428 = vperm.xlu2 %1819, %v293_v22   ;;  %1818 = vset.pattern.permute.xlu1 %v2112_v30 }
 0x112   :  { %436 = vperm.xlu0 %1820, %v294_v59   ;;  %420 = vperm.xlu1 %1818, %v292_v61  }
 0x119   :  { %452 = vperm.xlu2 %1819, %v2314_v58  }
 0x11a   :  { %476 = vperm.xlu0 %1820, %v299_v27   ;;  %444 = vperm.xlu1 %1818, %v295_v20  }
 0x121   :  { %468 = vperm.xlu2 %1819, %v298_v25  }
 0x122   :  { %1832 = vrot.lane.b32.xlu0 %v1808_v28, %s2113_s28  ;;  %460 = vperm.xlu1 %1818, %v297_v14  }
 0x123   :  { %1841 = vset.pattern.permute.xlu0 %v2733_v35 }
 0x129   :  { %1827 = vrot.lane.b32.xlu2 %v1813_v29, %s2115_s22 }
 0x12a   :  { %1837 = vrot.lane.b32.xlu0 %v1813_v29, %s2113_s28  ;;  %1822 = vrot.lane.b32.xlu1 %v1808_v28, %s2115_s22  ;;  %s1741_s28 = sshll.u32 %s2732_s11, 4  ;;  %s1742_s28 = int_to_ptr.hbm [resolvable:$true] %s1741_s28 }
 0x12b   :  { %1843 = vset.pattern.permute.xlu2 %v2733_v35  ;;  %1842 = vset.pattern.permute.xlu1 %v2733_v35 }
 0x131   :  { %755 = vperm.xlu2 %1843, %v294_v59  }
 0x132   :  { %739 = vperm.xlu0 %1841, %v292_v61   ;;  %747 = vperm.xlu1 %1842, %v293_v22  }
 0x139   :  { %771 = vperm.xlu2 %1843, %v2314_v58  }
 0x13a   :  { %779 = vperm.xlu0 %1841, %v297_v14   ;;  %v339_v36 = vpop.permute.xlu2 %338  ;;  %763 = vperm.xlu1 %1842, %v295_v20  }
 0x13b   :  { %v344_v49 = vperm.slane %v339_v36, %v2343_v40 }
 0x13d   :  { %v376_v57 = vmul.f32 %v344_v49, %v2232_v8 }
 0x141   :  { %795 = vperm.xlu2 %1843, %v299_v27  }
 0x142   :  { %787 = vperm.xlu0 %1841, %v298_v25   ;;  %v348_v31 = vpop.permute.xlu2 %347  ;;  %1844 = vset.pattern.permute.xlu1 %v2112_v30 }
 0x143   :  { %v353_v52 = vperm.slane %v348_v31, %v2343_v40  ;;  %v388_v31 = vsel %vm380_vm2, %v376_v57, 0.0 }
 0x145   :  { %v377_v61 = vmul.f32 %v353_v52, %v2234_v9 }
 0x149   :  { %1845 = vset.pattern.permute.xlu2 %v2112_v30 }
 0x14a   :  { %v357_v32 = vpop.permute.xlu2 %356  ;;  %1847 = vset.pattern.permute.xlu0 %v2737_v26 }
 0x14b   :  { %v362_v58 = vperm.slane %v357_v32, %v2343_v40 }
 0x14d   :  { %v378_v32 = vmul.f32 %v362_v58, %v2236_v10 }
 0x152   :  { %v366_v37 = vpop.permute.xlu2 %365  ;;  %v321_v38 = vpop.permute.xlu1 %320 }
 0x153   :  { %v303_v39 = vpop.permute.xlu0 %302  ;;  %v326_v42 = vperm.slane %v321_v38, %v2343_v40  ;;  %v371_v25 = vperm.slane %v366_v37, %v2343_v40  ;;  %v390_v38 = vsel %vm380_vm2, %v377_v61, 0.0 }
 0x154   :  { %v308_v41 = vperm.slane %v303_v39, %v2343_v40 }
 0x155   :  { %v374_v50 = vmul.f32 %v326_v42, %v2217_v5  ;;  %v379_v39 = vmul.f32 %v371_v25, %v2238_v11  ;;  %v392_v42 = vsel %vm380_vm2, %v378_v32, 0.0 }
 0x156   :  { %v372_v46 = vmul.f32 %v308_v41, %v2213_v3 }
 0x157   :  { %v384_v59 = vsel %vm380_vm2, %v374_v50, 0.0 }
 0x158   :  { %v381_v53 = vsel %vm380_vm2, %v372_v46, 0.0 }
 0x15a   :  { %v330_v43 = vpop.permute.xlu1 %329 }
 0x15b   :  { %v312_v44 = vpop.permute.xlu0 %311  ;;  %v634_v45 = vpop.permute.xlu2 %633  ;;  %v335_v47 = vperm.slane %v330_v43, %v2343_v40 }
 0x15c   :  { %v317_v48 = vperm.slane %v312_v44, %v2343_v40  ;;  %v639_v58 = vperm.slane %v634_v45, %v2343_v40 }
 0x15d   :  { %v375_v54 = vmul.f32 %v335_v47, %v2219_v6 }
 0x15e   :  { %v373_v51 = vmul.f32 %v317_v48, %v2215_v4  ;;  %v394_v48 = vsel %vm380_vm2, %v379_v39, 0.0 }
 0x15f   :  { %v386_v27 = vsel %vm380_vm2, %v375_v54, 0.0 }
 0x160   :  { %v382_v55 = vsel %vm380_vm2, %v373_v51, 0.0 }
 0x161   :  { %v383_v56 = vadd.f32 %v382_v55, %v381_v53 }
 0x163   :  { %v385_v14 = vadd.f32 %v384_v59, %v383_v56  ;;  %v2361_v20 = vpop.permute.xlu2 %1809  ;;  %v602_v22 = vpop.permute.xlu1 %601 }
 0x164   :  { %v594_v28 = vpop.permute.xlu0 %593  ;;  %v1811_v29 = vunpack.i.l.bf16 %v2361_v20  ;;  %v2741_v30 = vunpack.i.h.bf16 %v2361_v20  ;;  %v607_v33 = vperm.slane %v602_v22, %v2343_v40 }
 0x165   :  { %v387_v36 = vadd.f32 %v386_v27, %v385_v14  ;;  %v599_v34 = vperm.slane %v594_v28, %v2343_v40  ;;  %v661_v27 = vmul.f32 %v639_v58, %v2234_v9 }
 0x166   :  { %706 = vmatpush.msrb.mxu1 %v1811_v29  ;;  %v657_v43 = vmul.f32 %v607_v33, %v2215_v4 }
 0x167   :  { %v389_v37 = vadd.f32 %v388_v31, %v387_v36  ;;  %v656_v44 = vmul.f32 %v599_v34, %v2213_v3  ;;  %v673_v45 = vsel %vm380_vm2, %v661_v27, 0.0  ;;  %v916_v27 = vld.sshfl [vmem:[#allocation1 + $0x20] sm:$0xff pattern:$0x73625140] }
 0x168   :  { %707 = vmatpush.msrb.mxu1 %v2741_v30  ;;  %v665_v52 = vsel %vm380_vm2, %v657_v43, 0.0 }
 0x169   :  { %v391_v41 = vadd.f32 %v390_v38, %v389_v37  ;;  %v664_v53 = vsel %vm380_vm2, %v656_v44, 0.0 }
 0x16a   :  { %v666_v57 = vadd.f32 %v665_v52, %v664_v53 }
 0x16b   :  { %v610_v46 = vpop.permute.xlu1 %609  ;;  %v393_v47 = vadd.f32 %v392_v42, %v391_v41 }
 0x16c   :  { %v615_v49 = vperm.slane %v610_v46, %v2343_v40  ;;  %v618_v50 = vpop.permute.xlu0 %617 }
 0x16d   :  { %v395_v51 = vadd.f32 %v394_v48, %v393_v47  ;;  %v623_v55 = vperm.slane %v618_v50, %v2343_v40 }
 0x16e   :  { %v658_v54 = vmul.f32 %v615_v49, %v2217_v5  ;;  %v429_v49 = vpop.permute.xlu2 %428 }
 0x16f   :  { %1761 = vmatmul.msk.f32.vlgmr.msra.gmra.mxu1 %vm186_vm0, %v395_v51  ;;  %v659_v59 = vmul.f32 %v623_v55, %v2219_v6 }
 0x170   :  { %v667_v56 = vsel %vm380_vm2, %v658_v54, 0.0  ;;  %v434_v54 = vperm.slane %v429_v49, %v2343_v40 }
 0x171   :  { %v668_v61 = vadd.f32 %v667_v56, %v666_v57  ;;  %v669_v28 = vsel %vm380_vm2, %v659_v59, 0.0  ;;  %v915_v56 = vld.sshfl [vmem:[#allocation1] sm:$0xff pattern:$0x73625140] }
 0x173   :  { %v626_v14 = vpop.permute.xlu1 %625  ;;  %v670_v32 = vadd.f32 %v669_v28, %v668_v61 }
 0x174   :  { %v631_v22 = vperm.slane %v626_v14, %v2343_v40  ;;  %v642_v25 = vpop.permute.xlu0 %641 }
 0x175   :  { %v647_v31 = vperm.slane %v642_v25, %v2343_v40 }
 0x176   :  { %v660_v36 = vmul.f32 %v631_v22, %v2232_v8  ;;  %v453_v58 = vpop.permute.xlu2 %452 }
 0x177   :  { %v662_v37 = vmul.f32 %v647_v31, %v2236_v10  ;;  %v458_v28 = vperm.slane %v453_v58, %v2343_v40 }
 0x178   :  { %v671_v33 = vsel %vm380_vm2, %v660_v36, 0.0 }
 0x179   :  { %v672_v34 = vadd.f32 %v671_v33, %v670_v32  ;;  %v675_v46 = vsel %vm380_vm2, %v662_v37, 0.0 }
 0x17b   :  { %v674_v38 = vadd.f32 %v673_v45, %v672_v34  ;;  %v650_v39 = vpop.permute.xlu1 %649  ;;  %v487_v45 = vmul.f32 %v458_v28, %v2232_v8 }
 0x17c   :  { %v655_v41 = vperm.slane %v650_v39, %v2343_v40  ;;  %v2399_v42 = vpop.permute.xlu0 %1814 }
 0x17d   :  { %v2740_v43 = vunpack.i.l.bf16 %v2399_v42  ;;  %v2739_v44 = vunpack.i.h.bf16 %v2399_v42  ;;  %v676_v48 = vadd.f32 %v675_v46, %v674_v38 }
 0x17e   :  { %v663_v47 = vmul.f32 %v655_v41, %v2238_v11  ;;  %v469_v32 = vpop.permute.xlu2 %468 }
 0x17f   :  { %708 = vmatpush.msrb.mxu1 %v2740_v43  ;;  %v474_v39 = vperm.slane %v469_v32, %v2343_v40 }
 0x180   :  { %v677_v50 = vsel %vm380_vm2, %v663_v47, 0.0  ;;  %v498_v47 = vsel %vm380_vm2, %v487_v45, 0.0 }
 0x181   :  { %v678_v51 = vadd.f32 %v677_v50, %v676_v48  ;;  %709 = vmatpush.msrb.mxu1 %v2739_v44  ;;  %v489_v50 = vmul.f32 %v474_v39, %v2236_v10 }
 0x183   :  { %933 = vmatpush.msra.mxu1 %v2200_v0  ;;  %v484_v0 = vmul.f32 %v434_v54, %v2215_v4 }
 0x184   :  { %1765 = vmatmul.msk.f32.vlgmr.msrb.gmra.mxu1 %vm186_vm0, %v678_v51  ;;  %v421_v52 = vpop.permute.xlu1 %420  ;;  %v437_v55 = vpop.permute.xlu0 %436 }
 0x185   :  { %934 = vmatpush.msra.mxu1 %v2205_v1  ;;  %v426_v53 = vperm.slane %v421_v52, %v2343_v40  ;;  %v442_v59 = vperm.slane %v437_v55, %v2343_v40  ;;  %v492_v14 = vsel %vm380_vm2, %v484_v0, 0.0 }
 0x187   :  { %935 = vmatpush.msra.mxu1 %v2211_v2  ;;  %v483_v57 = vmul.f32 %v426_v53, %v2213_v3  ;;  %v485_v22 = vmul.f32 %v442_v59, %v2217_v5 }
 0x189   :  { %936 = vmatpush.msra.mxu1 %v2227_v7  ;;  %v491_v61 = vsel %vm380_vm2, %v483_v57, 0.0  ;;  %v494_v36 = vsel %vm380_vm2, %v485_v22, 0.0  ;;  %v502_v57 = vsel %vm380_vm2, %v489_v50, 0.0 }
 0x18a   :  { %v493_v25 = vadd.f32 %v492_v14, %v491_v61  ;;  %v2458_v14 = vld [vmem:[#allocation8 + $0x10] sm:$0xff] }
 0x18b   :  { %732 = vmatpush.msra.mxu2 %v2458_v14 }
 0x18c   :  { %1769 = vmatmul.msk.f32.vlgmr.msra.gmra.mxu1 %vm186_vm0, %v915_v56  ;;  %v445_v1 = vpop.permute.xlu1 %444  ;;  %v495_v33 = vadd.f32 %v494_v36, %v493_v25  ;;  %v477_v46 = vpop.permute.xlu0 %476  ;;  %v2472_v36 = vld [vmem:[#allocation8 + $0x8] sm:$0xff] }
 0x18d   :  { %v450_v2 = vperm.slane %v445_v1, %v2343_v40  ;;  %v482_v51 = vperm.slane %v477_v46, %v2343_v40  ;;  %v2442_v56 = vpop.permute.xlu2 %1827  ;;  %1131 = vmatpush.msrb.mxu2 %v2317_v62  ;;  %v149_v62 = vld [vmem:[#allocation8] sm:$0xff] }
 0x18e   :  { %v1829_v0 = vunpack.i.l.bf16 %v2442_v56  ;;  %v1830_v1 = vunpack.i.h.bf16 %v2442_v56 }
 0x18f   :  { %v486_v7 = vmul.f32 %v450_v2, %v2219_v6  ;;  %v490_v58 = vmul.f32 %v482_v51, %v2238_v11  ;;  %1132 = vmatpush.msrb.mxu2 %v2320_v63 }
 0x191   :  { %v496_v31 = vsel %vm380_vm2, %v486_v7, 0.0  ;;  %v504_v61 = vsel %vm380_vm2, %v490_v58, 0.0  ;;  %1133 = vmatpush.msrb.mxu2 %v2323_v23 }
 0x192   :  { %v497_v38 = vadd.f32 %v496_v31, %v495_v33 }
 0x193   :  { %1134 = vmatpush.msrb.mxu2 %v2326_v24 }
 0x194   :  { %1770 = vmatmul.msk.f32.gmra.mxu1 %vm186_vm0, %v916_v27  ;;  %v461_v34 = vpop.permute.xlu1 %460  ;;  %v499_v49 = vadd.f32 %v498_v47, %v497_v38  ;;  %v2467_v7 = vpop.permute.xlu0 %1832 }
 0x195   :  { %v466_v37 = vperm.slane %v461_v34, %v2343_v40 }
 0x197   :  { %v488_v41 = vmul.f32 %v466_v37, %v2234_v9 }
 0x199   :  { %v500_v48 = vsel %vm380_vm2, %v488_v41, 0.0 }
 0x19a   :  { %v501_v52 = vadd.f32 %v500_v48, %v499_v49 }
 0x19c   :  { %v2438_v53 = vpop.permute.xlu1 %1822  ;;  %v503_v59 = vadd.f32 %v502_v57, %v501_v52  ;;  %v2470_v27 = vpop.permute.xlu0 %1837 }
 0x19d   :  { %v1824_v54 = vunpack.i.l.bf16 %v2438_v53  ;;  %v1825_v55 = vunpack.i.h.bf16 %v2438_v53  ;;  %v2742_v53 = vunpack.i.h.bf16 %v2361_v20 }
 0x19e   :  { %v505_v2 = vadd.f32 %v504_v61, %v503_v59  ;;  %v756_v59 = vpop.permute.xlu2 %755 }
 0x19f   :  { %537 = vmatpush.msra.mxu3 %v1824_v54 }
 0x1a1   :  { %538 = vmatpush.msra.mxu3 %v1825_v55 }
 0x1a3   :  { %539 = vmatpush.msra.mxu3 %v1829_v0 }
 0x1a4   :  { %v748_v31 = vpop.permute.xlu1 %747  ;;  %v740_v38 = vpop.permute.xlu0 %739 }
 0x1a5   :  { %540 = vmatpush.msra.mxu3 %v1830_v1 }
 0x1a6   :  { %1762 = vmatmul.msk.f32.vlgmr.msra.gmra.mxu3 %vm186_vm0, %v505_v2 }
 0x1a7   :  { %564 = vmatpush.msrb.mxu3 %v2472_v36 }
 0x1a9   :  { %587 = vmatpush.msra.mxu3 %v149_v62 }
 0x1ac   :  { %v764_v60 = vpop.permute.xlu1 %763 }
 0x1ec   :  { %v2465_v22 = vpop.f32.mrf.mxu1 }
 0x201   :  { %v711_v25 = vpop.f32.mrf.mxu1 }
 0x202   :  { %1766 = vmatmul.msk.f32.vlgmr.msra.gmra.mxu2 %vm545_vm3, %v711_v25  ;;  %v745_v25 = vperm.slane %v740_v38, %v2343_v40 }
 0x203   :  { %1290 = vmatpush.msra.mxu2 %v149_v62  ;;  %v753_v62 = vperm.slane %v748_v31, %v2343_v40 }
 0x204   :  { %v802_v26 = vmul.f32 %v745_v25, %v2213_v3 }
 0x205   :  { %v803_v44 = vmul.f32 %v753_v62, %v2215_v4 }
 0x206   :  { %v810_v38 = vsel %vm380_vm2, %v802_v26, 0.0 }
 0x207   :  { %v811_v31 = vsel %vm380_vm2, %v803_v44, 0.0 }
 0x209   :  { %v938_v28 = vpop.f32.mrf.mxu1 }
 0x20a   :  { %v946_v63 = vrot.slane %v938_v28, 2  ;;  %v947_v23 = vrot.slane %v938_v28, 4  ;;  %v948_v24 = vrot.slane %v938_v28, 6  ;;  %v958_v39 = vsel %vm236_vm1, %v938_v28, -inf }
 0x20c   :  { %v959_v41 = vsel %vm236_vm1, %v946_v63, -inf  ;;  %v960_v46 = vsel %vm236_vm1, %v947_v23, -inf  ;;  %v961_v47 = vsel %vm236_vm1, %v948_v24, -inf }
 0x211   :  { %v941_v32 = vpop.f32.mrf.mxu1 }
 0x212   :  { %v949_v33 = vrot.slane %v941_v32, 2  ;;  %v950_v34 = vrot.slane %v941_v32, 4  ;;  %v951_v45 = vrot.slane %v941_v32, 6  ;;  %v962_v37 = vsel %vm236_vm1, %v941_v32, -inf }
 0x213   :  { %v963_v51 = vmax.f32 %v958_v39, %v962_v37  ;;  %v761_v37 = vperm.slane %v756_v59, %v2343_v40  ;;  %v780_v39 = vpop.permute.xlu0 %779 }
 0x214   :  { %v964_v48 = vsel %vm236_vm1, %v949_v33, -inf  ;;  %v966_v49 = vsel %vm236_vm1, %v950_v34, -inf  ;;  %v968_v50 = vsel %vm236_vm1, %v951_v45, -inf }
 0x215   :  { %v965_v52 = vmax.f32 %v959_v41, %v964_v48  ;;  %v967_v57 = vmax.f32 %v960_v46, %v966_v49  ;;  %v969_v58 = vmax.f32 %v961_v47, %v968_v50  ;;  %v769_v46 = vperm.slane %v764_v60, %v2343_v40  ;;  %v772_v49 = vpop.permute.xlu2 %771 }
 0x216   :  { %v804_v3 = vmul.f32 %v761_v37, %v2217_v5 }
 0x217   :  { %v970_v61 = vmax.f32 %v963_v51, %v965_v52  ;;  %v971_v2 = vmax.f32 %v967_v57, %v969_v58  ;;  %v812_v57 = vadd.f32 %v811_v31, %v810_v38  ;;  %v785_v58 = vperm.slane %v780_v39, %v2343_v40 }
 0x218   :  { %v813_v26 = vsel %vm380_vm2, %v804_v3, 0.0  ;;  %v1840_v3 = vunpack.i.h.bf16 %v2470_v27 }
 0x219   :  { %v972_v35 = vmax.f32 %v970_v61, %v971_v2  ;;  %v1835_v61 = vunpack.i.h.bf16 %v2467_v7 }
 0x21b   :  { %v973_v43 = vsub.f32 %v938_v28, %v972_v35  ;;  %v974_v30 = vsub.f32 %v946_v63, %v972_v35  ;;  %v975_v41 = vsub.f32 %v947_v23, %v972_v35  ;;  %v976_v47 = vsub.f32 %v948_v24, %v972_v35 }
 0x21c   :  { %v977_v50 = vsub.f32 %v941_v32, %v972_v35  ;;  %v805_v28 = vmul.f32 %v769_v46, %v2219_v6  ;;  %v978_v63 = vsub.f32 %v949_v33, %v972_v35  ;;  %v777_v23 = vperm.slane %v772_v49, %v2343_v40  ;;  %v788_v32 = vpop.permute.xlu0 %787 }
 0x21d   :  { %v981_v48 = vmul.f32 1.442695, %v973_v43  ;;  %v983_v51 = vmul.f32 1.442695, %v974_v30  ;;  %v985_v4 = vmul.f32 1.442695, %v975_v41  ;;  %v979_v60 = vsub.f32 %v950_v34, %v972_v35  ;;  %v796_v38 = vpop.permute.xlu2 %795 }
 0x21e   :  { %v987_v52 = vmul.f32 1.442695, %v976_v47  ;;  %v989_v43 = vmul.f32 1.442695, %v977_v50  ;;  %v815_v44 = vsel %vm380_vm2, %v805_v28, 0.0  ;;  %v980_v30 = vsub.f32 %v951_v45, %v972_v35 }
 0x21f   :  { %1873 = vpow2.f32 %v981_v48  ;;  %v991_v24 = vmul.f32 1.442695, %v978_v63  ;;  %v806_v5 = vmul.f32 %v777_v23, %v2232_v8  ;;  %v814_v6 = vadd.f32 %v813_v26, %v812_v57 }
 0x220   :  { %1875 = vpow2.f32 %v983_v51  ;;  %v1834_v33 = vunpack.i.l.bf16 %v2467_v7  ;;  %v993_v34 = vmul.f32 1.442695, %v979_v60  ;;  %v793_v35 = vperm.slane %v788_v32, %v2343_v40 }
 0x221   :  { %1877 = vpow2.f32 %v985_v4  ;;  %v816_v2 = vadd.f32 %v815_v44, %v814_v6  ;;  %v995_v45 = vmul.f32 1.442695, %v980_v30  ;;  %v817_v41 = vsel %vm380_vm2, %v806_v5, 0.0 }
 0x222   :  { %1879 = vpow2.f32 %v987_v52  ;;  %v1839_v47 = vunpack.i.l.bf16 %v2470_v27  ;;  %v807_v48 = vmul.f32 %v785_v58, %v2234_v9  ;;  %v808_v4 = vmul.f32 %v793_v35, %v2236_v10 }
 0x223   :  { %1881 = vpow2.f32 %v989_v43  ;;  %v818_v31 = vadd.f32 %v817_v41, %v816_v2  ;;  %v801_v52 = vperm.slane %v796_v38, %v2343_v40  ;;  %v2559_v41 = vld [vmem:[#allocation8 + $0x18] sm:$0xff] }
 0x224   :  { %1883 = vpow2.f32 %v991_v24  ;;  %v819_v23 = vsel %vm380_vm2, %v807_v48, 0.0  ;;  %v821_v26 = vsel %vm380_vm2, %v808_v4, 0.0  ;;  %878 = vmatpush.msrb.mxu0 %v2559_v41 }
 0x225   :  { %v2499_v59 = vpop.eup %1873  ;;  %1885 = vpow2.f32 %v993_v34  ;;  %v820_v60 = vadd.f32 %v819_v23, %v818_v31  ;;  %v809_v5 = vmul.f32 %v801_v52, %v2238_v11 }
 0x226   :  { %v1876_v25 = vpop.eup %1875  ;;  %v997_v8 = vsel %vm236_vm1, %v2499_v59, 0.0  ;;  %1887 = vpow2.f32 %v995_v45  ;;  %1267 = vmatpush.msra.mxu0 %v2472_v36 }
 0x227   :  { %v1878_v37 = vpop.eup %1877  ;;  %v998_v39 = vsel %vm236_vm1, %v1876_v25, 0.0  ;;  %v822_v32 = vadd.f32 %v821_v26, %v820_v60  ;;  %v823_v35 = vsel %vm380_vm2, %v809_v5, 0.0 }
 0x228   :  { %v1880_v46 = vpop.eup %1879  ;;  %v999_v49 = vadd.f32 %v998_v39, %v997_v8  ;;  %v1000_v50 = vsel %vm236_vm1, %v1878_v37, 0.0  ;;  %v2745_v8 = vmov 2  }
 0x229   :  { %v542_v62 = vpop.f32.mrf.mxu3  ;;  %v1882_v51 = vpop.eup %1881  ;;  %v1002_v9 = vsel %vm236_vm1, %v1880_v46, 0.0  ;;  %v824_v11 = vadd.f32 %v823_v35, %v822_v32 }
 0x22a   :  { %1763 = vmatmul.msk.f32.vlgmr.msrb.gmra.mxu3 %vm545_vm3, %v542_v62  ;;  %v1001_v28 = vadd.f32 %v1000_v50, %v999_v49  ;;  %v1884_v63 = vpop.eup %1883  ;;  %v1004_v43 = vsel %vm236_vm1, %v1882_v51, 0.0  ;;  %v2744_v62 = vunpack.i.h.bf16 %v2399_v42 }
 0x22b   :  { %852 = vmatpush.msrb.mxu3 %v1834_v33  ;;  %v1886_v10 = vpop.eup %1885  ;;  %v1006_v30 = vsel %vm236_vm1, %v1884_v63, 0.0 }
 0x22c   :  { %v1003_v57 = vadd.f32 %v1002_v9, %v1001_v28  ;;  %v1888_v24 = vpop.eup %1887  ;;  %v1008_v58 = vsel %vm236_vm1, %v1886_v10, 0.0 }
 0x22d   :  { %853 = vmatpush.msrb.mxu3 %v1835_v61  ;;  %v1010_v2 = vsel %vm236_vm1, %v1888_v24, 0.0 }
 0x22e   :  { %v1005_v44 = vadd.f32 %v1004_v43, %v1003_v57 }
 0x22f   :  { %854 = vmatpush.msrb.mxu3 %v1839_v47 }
 0x230   :  { %v1007_v6 = vadd.f32 %v1006_v30, %v1005_v44 }
 0x231   :  { %855 = vmatpush.msrb.mxu3 %v1840_v3 }
 0x232   :  { %1764 = vmatmul.msk.f32.vlgmr.msra.gmra.mxu3 %vm545_vm3, %v2465_v22  ;;  %v1009_v34 = vadd.f32 %v1008_v58, %v1007_v6 }
 0x233   :  { %1241 = vmatpush.msra.mxu3 %v1824_v54 }
 0x234   :  { %v1011_v22 = vadd.f32 %v1010_v2, %v1009_v34 }
 0x235   :  { %1242 = vmatpush.msra.mxu3 %v1825_v55  ;;  %v2743_v55 = vunpack.i.l.bf16 %v2399_v42 }
 0x236   :  { %1889 = vrcp.f32 %v1011_v22 }
 0x237   :  { %1243 = vmatpush.msra.mxu3 %v1829_v0 }
 0x239   :  { %1244 = vmatpush.msra.mxu3 %v1830_v1 }
 0x23a   :  { %1767 = vmatmul.msk.f32.vlgmr.msrb.gmra.mxu3 %vm186_vm0, %v824_v11 }
 0x23b   :  { %1397 = vmatpush.msrb.mxu3 %v1811_v29 }
 0x23c   :  { %v1890_v54 = vpop.eup %1889 }
 0x23d   :  { %1398 = vmatpush.msrb.mxu3 %v2742_v53  ;;  %v1014_v45 = vmul.f32 %v1890_v54, %v1876_v25  ;;  %v1013_v0 = vmul.f32 %v1890_v54, %v2499_v59  ;;  %v1017_v56 = vmul.f32 %v1890_v54, %v1882_v51  ;;  %v1015_v1 = vmul.f32 %v1890_v54, %v1878_v37 }
 0x23e   :  { %v1020_v20 = vmul.f32 %v1890_v54, %v1888_v24  ;;  %v1016_v29 = vmul.f32 %v1890_v54, %v1880_v46  ;;  %v1018_v25 = vmul.f32 %v1890_v54, %v1884_v63  ;;  %v2746_v59 = vmov 0  }
 0x23f   :  { %1399 = vmatpush.msrb.mxu3 %v2743_v55  ;;  %1304 = vperm.xlu0 %1847, %v1014_v45   ;;  %v1019_v42 = vmul.f32 %v1890_v54, %v1886_v10  ;;  %v2747_v37 = vmov 3  }
 0x240   :  { %1148 = vperm.xlu2 %1845, %v1014_v45   ;;  %1140 = vperm.xlu1 %1844, %v1013_v0  }
 0x241   :  { %1400 = vmatpush.msrb.mxu3 %v2744_v62 }
 0x247   :  { %1328 = vperm.xlu0 %1847, %v1017_v56  }
 0x248   :  { %1172 = vperm.xlu2 %1845, %v1017_v56   ;;  %1156 = vperm.xlu1 %1844, %v1015_v1  }
 0x24f   :  { %1352 = vperm.xlu0 %1847, %v1020_v20  }
 0x250   :  { %1846 = vset.pattern.permute.xlu2 %v2745_v8  ;;  %1164 = vperm.xlu1 %1844, %v1016_v29  }
 0x251   :  { %1296 = vperm.xlu2 %1846, %v1013_v0  }
 0x257   :  { %1851 = vset.pattern.permute.xlu0 %v2746_v59 }
 0x258   :  { %1180 = vperm.xlu1 %1844, %v1018_v25   ;;  %1041 = vperm.xlu0 %1851, %v1015_v1  }
 0x259   :  { %1312 = vperm.xlu2 %1846, %v1015_v1  }
 0x260   :  { %1188 = vperm.xlu1 %1844, %v1019_v42   ;;  %1086 = vperm.xlu0 %1851, %v1020_v20  }
 0x261   :  { %1320 = vperm.xlu2 %1846, %v1016_v29  }
 0x268   :  { %1196 = vperm.xlu1 %1844, %v1020_v20   ;;  %1854 = vset.pattern.permute.xlu0 %v2747_v37 }
 0x269   :  { %1344 = vperm.xlu2 %1846, %v1019_v42   ;;  %1446 = vperm.xlu0 %1854, %v1015_v1  }
 0x270   :  { %1848 = vset.pattern.permute.xlu1 %v2745_v8 }
 0x271   :  { %1850 = vset.pattern.permute.xlu2 %v2746_v59  ;;  %1336 = vperm.xlu1 %1848, %v1018_v25  }
 0x272   :  { %1486 = vperm.xlu0 %1854, %v1020_v20   ;;  %1032 = vperm.xlu2 %1850, %v1014_v45  }
 0x279   :  { %1849 = vset.pattern.permute.xlu1 %v2746_v59 }
 0x27a   :  { %1059 = vperm.xlu2 %1850, %v1017_v56   ;;  %1023 = vperm.xlu1 %1849, %v1013_v0  }
 0x282   :  { %1077 = vperm.xlu2 %1850, %v1019_v42   ;;  %1050 = vperm.xlu1 %1849, %v1016_v29  }
 0x28a   :  { %1853 = vset.pattern.permute.xlu2 %v2747_v37  ;;  %1068 = vperm.xlu1 %1849, %v1018_v25  }
 0x28b   :  { %1438 = vperm.xlu2 %1853, %v1014_v45  }
 0x292   :  { %1852 = vset.pattern.permute.xlu1 %v2747_v37 }
 0x293   :  { %1462 = vperm.xlu2 %1853, %v1017_v56   ;;  %1430 = vperm.xlu1 %1852, %v1013_v0  }
 0x29a   :  { %v1149_v39 = vpop.permute.xlu2 %1148 }
 0x29b   :  { %1478 = vperm.xlu2 %1853, %v1019_v42   ;;  %1454 = vperm.xlu1 %1852, %v1016_v29   ;;  %v1154_v36 = vperm.slane %v1149_v39, %v2343_v40 }
 0x29d   :  { %v1204_v43 = vmul.f32 %v1154_v36, %v2247_v13 }
 0x29f   :  { %v1212_v24 = vsel %vm380_vm2, %v1204_v43, 0.0 }
 0x2a2   :  { %v1173_v48 = vpop.permute.xlu2 %1172 }
 0x2a3   :  { %1470 = vperm.xlu1 %1852, %v1018_v25   ;;  %v1178_v5 = vperm.slane %v1173_v48, %v2343_v40 }
 0x2a5   :  { %v1207_v54 = vmul.f32 %v1178_v5, %v2256_v17 }
 0x2a7   :  { %v1218_v8 = vsel %vm380_vm2, %v1207_v54, 0.0 }
 0x2ab   :  { %v1297_v4 = vpop.permute.xlu2 %1296 }
 0x2ac   :  { %v1302_v11 = vperm.slane %v1297_v4, %v2343_v40 }
 0x2ad   :  { %v566_v46 = vpop.f32.mrf.mxu3 }
 0x2ae   :  { %v1359_v20 = vmul.f32 %v1302_v11, %v2245_v12 }
 0x2b1   :  { %v1305_v10 = vpop.permute.xlu0 %1304 }
 0x2b2   :  { %v1141_v49 = vpop.permute.xlu1 %1140  ;;  %v1310_v58 = vperm.slane %v1305_v10, %v2343_v40 }
 0x2b3   :  { %v1313_v9 = vpop.permute.xlu2 %1312  ;;  %v1146_v63 = vperm.slane %v1141_v49, %v2343_v40 }
 0x2b4   :  { %v1360_v45 = vmul.f32 %v1310_v58, %v2247_v13  ;;  %v1318_v0 = vperm.slane %v1313_v9, %v2343_v40 }
 0x2b5   :  { %v589_v38 = vpop.f32.mrf.mxu3  ;;  %v1203_v57 = vmul.f32 %v1146_v63, %v2245_v12 }
 0x2b6   :  { %v2563_v31 = vadd.f32 %v589_v38, %v566_v46  ;;  %v1368_v59 = vsel %vm380_vm2, %v1360_v45, 0.0  ;;  %v1361_v42 = vmul.f32 %v1318_v0, %v2249_v15  ;;  %v1367_v38 = vsel %vm380_vm2, %v1359_v20, 0.0 }
 0x2b7   :  { %v1369_v4 = vadd.f32 %v1368_v59, %v1367_v38 }
 0x2b8   :  { %v1370_v9 = vsel %vm380_vm2, %v1361_v42, 0.0 }
 0x2b9   :  { %v1329_v56 = vpop.permute.xlu0 %1328 }
 0x2ba   :  { %v1157_v50 = vpop.permute.xlu1 %1156  ;;  %v1334_v63 = vperm.slane %v1329_v56, %v2343_v40 }
 0x2bb   :  { %v1162_v52 = vperm.slane %v1157_v50, %v2343_v40  ;;  %v1321_v30 = vpop.permute.xlu2 %1320 }
 0x2bc   :  { %v1326_v29 = vperm.slane %v1321_v30, %v2343_v40  ;;  %v1363_v10 = vmul.f32 %v1334_v63, %v2256_v17 }
 0x2bd   :  { %v857_v51 = vpop.f32.mrf.mxu3  ;;  %v1205_v26 = vmul.f32 %v1162_v52, %v2249_v15 }
 0x2be   :  { %1768 = vmatmul.msk.f32.vlgmr.msrb.gmra.mxu0 %vm545_vm3, %v857_v51  ;;  %v1362_v50 = vmul.f32 %v1326_v29, %v2252_v16 }
 0x2bf   :  { %1423 = vmatpush.msrb.mxu0 %v2458_v14  ;;  %v1211_v14 = vsel %vm380_vm2, %v1203_v57, 0.0  ;;  %v1214_v6 = vsel %vm380_vm2, %v1205_v26, 0.0 }
 0x2c0   :  { %v1213_v34 = vadd.f32 %v1212_v24, %v1211_v14 }
 0x2c1   :  { %v1353_v43 = vpop.permute.xlu0 %1352 }
 0x2c2   :  { %v1165_v28 = vpop.permute.xlu1 %1164  ;;  %v1215_v53 = vadd.f32 %v1214_v6, %v1213_v34  ;;  %v1358_v30 = vperm.slane %v1353_v43, %v2343_v40  ;;  %v1374_v6 = vsel %vm380_vm2, %v1363_v10, 0.0 }
 0x2c3   :  { %v1170_v60 = vperm.slane %v1165_v28, %v2343_v40  ;;  %v1345_v37 = vpop.permute.xlu2 %1344 }
 0x2c4   :  { %v1350_v26 = vperm.slane %v1345_v37, %v2343_v40 }
 0x2c5   :  { %v1206_v44 = vmul.f32 %v1170_v60, %v2252_v16  ;;  %v1371_v60 = vadd.f32 %v1370_v9, %v1369_v4 }
 0x2c7   :  { %v1216_v35 = vsel %vm380_vm2, %v1206_v44, 0.0 }
 0x2c8   :  { %v1217_v62 = vadd.f32 %v1216_v35, %v1215_v53 }
 0x2ca   :  { %v1181_v23 = vpop.permute.xlu1 %1180  ;;  %v1219_v39 = vadd.f32 %v1218_v8, %v1217_v62  ;;  %v1042_v56 = vpop.permute.xlu0 %1041 }
 0x2cb   :  { %v1186_v32 = vperm.slane %v1181_v23, %v2343_v40  ;;  %v1372_v23 = vsel %vm380_vm2, %v1362_v50, 0.0  ;;  %v1047_v29 = vperm.slane %v1042_v56, %v2343_v40 }
 0x2cc   :  { %v1373_v14 = vadd.f32 %v1372_v23, %v1371_v60  ;;  %v1033_v24 = vpop.permute.xlu2 %1032 }
 0x2cd   :  { %v1208_v55 = vmul.f32 %v1186_v32, %v2259_v18  ;;  %v1365_v32 = vmul.f32 %v1350_v26, %v2261_v19  ;;  %v1038_v45 = vperm.slane %v1033_v24, %v2343_v40  ;;  %v1095_v42 = vmul.f32 %v1047_v29, %v2249_v15  ;;  %v1569_v26 = vld [vmem:[%s2727_s6 + $0x30] sm:$0xff] }
 0x2ce   :  { %v1375_v34 = vadd.f32 %v1374_v6, %v1373_v14  ;;  %v1567_v14 = vld [vmem:[%s2727_s6 + $0x20] sm:$0xff] }
 0x2cf   :  { %v1220_v25 = vsel %vm380_vm2, %v1208_v55, 0.0  ;;  %v1378_v11 = vsel %vm380_vm2, %v1365_v32, 0.0  ;;  %v1094_v8 = vmul.f32 %v1038_v45, %v2247_v13  ;;  %v1104_v50 = vsel %vm380_vm2, %v1095_v42, 0.0 }
 0x2d0   :  { %v1221_v51 = vadd.f32 %v1220_v25, %v1219_v39 }
 0x2d1   :  { %v1102_v37 = vsel %vm380_vm2, %v1094_v8, 0.0 }
 0x2d2   :  { %v1189_v2 = vpop.permute.xlu1 %1188  ;;  %v1087_v4 = vpop.permute.xlu0 %1086 }
 0x2d3   :  { %v1194_v22 = vperm.slane %v1189_v2, %v2343_v40  ;;  %v1366_v2 = vmul.f32 %v1358_v30, %v2264_v21  ;;  %v1092_v23 = vperm.slane %v1087_v4, %v2343_v40 }
 0x2d5   :  { %v1209_v1 = vmul.f32 %v1194_v22, %v2261_v19  ;;  %v1380_v54 = vsel %vm380_vm2, %v1366_v2, 0.0  ;;  %v1100_v30 = vmul.f32 %v1092_v23, %v2264_v21  ;;  %v1565_v2 = vld [vmem:[%s2727_s6 + $0x10] sm:$0xff] }
 0x2d7   :  { %v1222_v48 = vsel %vm380_vm2, %v1209_v1, 0.0  ;;  %v1060_v1 = vpop.permute.xlu2 %1059 }
 0x2d8   :  { %v1223_v36 = vadd.f32 %v1222_v48, %v1221_v51  ;;  %v1065_v48 = vperm.slane %v1060_v1, %v2343_v40 }
 0x2da   :  { %v1197_v46 = vpop.permute.xlu1 %1196  ;;  %v1097_v9 = vmul.f32 %v1065_v48, %v2256_v17 }
 0x2db   :  { %v1202_v49 = vperm.slane %v1197_v46, %v2343_v40  ;;  %v1447_v56 = vpop.permute.xlu0 %1446 }
 0x2dc   :  { %v1108_v60 = vsel %vm380_vm2, %v1097_v9, 0.0  ;;  %v1452_v29 = vperm.slane %v1447_v56, %v2343_v40  ;;  %v1636_v9 = vld [vmem:[#allocation10 + $0x70] sm:$0xff] }
 0x2dd   :  { %v1210_v28 = vmul.f32 %v1202_v49, %v2264_v21 }
 0x2de   :  { %v1495_v42 = vmul.f32 %v1452_v29, %v2249_v15  ;;  %v1648_v29 = vld [vmem:[#allocation10 + $0xd0] sm:$0xff] }
 0x2df   :  { %v1224_v52 = vsel %vm380_vm2, %v1210_v28, 0.0  ;;  %v1078_v38 = vpop.permute.xlu2 %1077 }
 0x2e0   :  { %v1225_v57 = vadd.f32 %v1224_v52, %v1223_v36  ;;  %v1083_v63 = vperm.slane %v1078_v38, %v2343_v40 }
 0x2e2   :  { %1772 = vmatmul.msk.f32.vlgmr.msra.gmra.mxu3 %vm186_vm0, %v1225_v57  ;;  %v1099_v43 = vmul.f32 %v1083_v63, %v2261_v19 }
 0x2e3   :  { %v1337_v44 = vpop.permute.xlu1 %1336  ;;  %1592 = vmatpush.msra.mxu3 %v1569_v26  ;;  %v1566_v26 = vld [vmem:[%s2727_s6 + $0x18] sm:$0xff] }
 0x2e4   :  { %v1342_v5 = vperm.slane %v1337_v44, %v2343_v40  ;;  %v1112_v6 = vsel %vm380_vm2, %v1099_v43, 0.0  ;;  %v1487_v63 = vpop.permute.xlu0 %1486  ;;  %v1632_v43 = vld [vmem:[#allocation10 + $0x50] sm:$0xff] }
 0x2e5   :  { %1593 = vmatpush.msra.mxu3 %v1567_v14  ;;  %v1631_v14 = vld [vmem:[#allocation10 + $0x48] sm:$0xff] }
 0x2e6   :  { %v1364_v58 = vmul.f32 %v1342_v5, %v2259_v18 }
 0x2e7   :  { %1594 = vmatpush.msra.mxu3 %v1565_v2  ;;  %v1625_v2 = vld [vmem:[#allocation10 + $0x18] sm:$0xff] }
 0x2e8   :  { %v1376_v35 = vsel %vm380_vm2, %v1364_v58, 0.0  ;;  %v1114_v58 = vsel %vm380_vm2, %v1100_v30, 0.0 }
 0x2e9   :  { %v1377_v22 = vadd.f32 %v1376_v35, %v1375_v34  ;;  %v1563_v35 = vld [vmem:[%s2727_s6] sm:$0xff] }
 0x2ea   :  { %1595 = vmatpush.msra.mxu3 %v1563_v35  ;;  %v1624_v35 = vld [vmem:[#allocation10 + $0x10] sm:$0xff] }
 0x2eb   :  { %v1379_v53 = vadd.f32 %v1378_v11, %v1377_v22  ;;  %v734_v22 = vpop.f32.mrf.mxu2 }
 0x2ec   :  { %v1024_v55 = vpop.permute.xlu1 %1023  ;;  %v737_v11 = vadd.f32 %v734_v22, %v2563_v31  ;;  %v1623_v22 = vld [vmem:[#allocation10 + $0x8] sm:$0xff] }
 0x2ed   :  { %v1381_v0 = vadd.f32 %v1380_v54, %v1379_v53  ;;  %v1029_v62 = vperm.slane %v1024_v55, %v2343_v40  ;;  %v1439_v55 = vpop.permute.xlu2 %1438 }
 0x2ef   :  { %v1093_v20 = vmul.f32 %v1029_v62, %v2245_v12  ;;  %1775 = vmatmul.msk.f32.vlgmr.msrb.gmra.mxu3 %vm186_vm0, %v1381_v0  ;;  %v1444_v62 = vperm.slane %v1439_v55, %v2343_v40 }
 0x2f1   :  { %v1101_v25 = vsel %vm380_vm2, %v1093_v20, 0.0  ;;  %v1494_v31 = vmul.f32 %v1444_v62, %v2247_v13  ;;  %v1504_v13 = vsel %vm380_vm2, %v1495_v42, 0.0  ;;  %v1651_v62 = vld [vmem:[#allocation10 + $0xe8] sm:$0xff] }
 0x2f2   :  { %v1103_v46 = vadd.f32 %v1102_v37, %v1101_v25  ;;  %v1643_v42 = vld [vmem:[#allocation10 + $0xa8] sm:$0xff] }
 0x2f3   :  { %v1502_v37 = vsel %vm380_vm2, %v1494_v31, 0.0  ;;  %v1647_v31 = vld [vmem:[#allocation10 + $0xc8] sm:$0xff] }
 0x2f4   :  { %v1051_v59 = vpop.permute.xlu1 %1050  ;;  %v1105_v28 = vadd.f32 %v1104_v50, %v1103_v46 }
 0x2f5   :  { %v1056_v39 = vperm.slane %v1051_v59, %v2343_v40  ;;  %v1463_v20 = vpop.permute.xlu2 %1462 }
 0x2f7   :  { %v1096_v49 = vmul.f32 %v1056_v39, %v2252_v16 }
 0x2f9   :  { %v1106_v51 = vsel %vm380_vm2, %v1096_v49, 0.0 }
 0x2fa   :  { %v1107_v36 = vadd.f32 %v1106_v51, %v1105_v28 }
 0x2fc   :  { %v1069_v52 = vpop.permute.xlu1 %1068  ;;  %v1109_v44 = vadd.f32 %v1108_v60, %v1107_v36  ;;  %v1568_v60 = vld [vmem:[%s2727_s6 + $0x28] sm:$0xff] }
 0x2fd   :  { %v1074_v57 = vperm.slane %v1069_v52, %v2343_v40  ;;  %v1479_v15 = vpop.permute.xlu2 %1478  ;;  %v1634_v52 = vld [vmem:[#allocation10 + $0x60] sm:$0xff] }
 0x2fe   :  { %v1484_v28 = vperm.slane %v1479_v15, %v2343_v40 }
 0x2ff   :  { %v1098_v10 = vmul.f32 %v1074_v57, %v2259_v18  ;;  %v1570_v57 = vld [vmem:[%s2727_s6 + $0x38] sm:$0xff] }
 0x301   :  { %v1110_v24 = vsel %vm380_vm2, %v1098_v10, 0.0 }
 0x302   :  { %v1111_v5 = vadd.f32 %v1110_v24, %v1109_v44  ;;  %v1564_v44 = vld [vmem:[%s2727_s6 + $0x8] sm:$0xff] }
 0x304   :  { %v1113_v32 = vadd.f32 %v1112_v6, %v1111_v5  ;;  %v1629_v5 = vld [vmem:[#allocation10 + $0x38] sm:$0xff]  ;;  %v1628_v6 = vld [vmem:[#allocation10 + $0x30] sm:$0xff] }
 0x306   :  { %v1115_v34 = vadd.f32 %v1114_v58, %v1113_v32  ;;  %v1627_v32 = vld [vmem:[#allocation10 + $0x28] sm:$0xff] }
 0x308   :  { %1771 = vmatmul.msk.f32.vlgmr.msrb.gmra.mxu2 %vm186_vm0, %v1115_v34  ;;  %v1626_v34 = vld [vmem:[#allocation10 + $0x20] sm:$0xff] }
 0x309   :  { %1557 = vmatpush.msrb.mxu2 %v2559_v41  ;;  %v1431_v41 = vpop.permute.xlu1 %1430 }
 0x30a   :  { %v1436_v0 = vperm.slane %v1431_v41, %v2343_v40 }
 0x30c   :  { %v1493_v1 = vmul.f32 %v1436_v0, %v2245_v12  ;;  %v1468_v12 = vperm.slane %v1463_v20, %v2343_v40  ;;  %v1652_v0 = vld [vmem:[#allocation10 + $0xf0] sm:$0xff]  ;;  %v1649_v20 = vld [vmem:[#allocation10 + $0xd8] sm:$0xff] }
 0x30e   :  { %v1501_v25 = vsel %vm380_vm2, %v1493_v1, 0.0  ;;  %v1650_v1 = vld [vmem:[#allocation10 + $0xe0] sm:$0xff] }
 0x30f   :  { %v1503_v46 = vadd.f32 %v1502_v37, %v1501_v25  ;;  %v1645_v25 = vld [vmem:[#allocation10 + $0xb8] sm:$0xff]  ;;  %v1642_v37 = vld [vmem:[#allocation10 + $0xa0] sm:$0xff] }
 0x311   :  { %v1455_v45 = vpop.permute.xlu1 %1454  ;;  %v1505_v50 = vadd.f32 %v1504_v13, %v1503_v46  ;;  %v1640_v46 = vld [vmem:[#allocation10 + $0x90] sm:$0xff] }
 0x312   :  { %v1460_v8 = vperm.slane %v1455_v45, %v2343_v40  ;;  %v1653_v45 = vld [vmem:[#allocation10 + $0xf8] sm:$0xff] }
 0x314   :  { %v1496_v39 = vmul.f32 %v1460_v8, %v2252_v16  ;;  %v1497_v16 = vmul.f32 %v1468_v12, %v2256_v17  ;;  %v1635_v17 = vld [vmem:[#allocation10 + $0x68] sm:$0xff]  ;;  %v1646_v8 = vld [vmem:[#allocation10 + $0xc0] sm:$0xff] }
 0x315   :  { %v1638_v12 = vld [vmem:[#allocation10 + $0x80] sm:$0xff] }
 0x316   :  { %v1506_v38 = vsel %vm380_vm2, %v1496_v39, 0.0  ;;  %v1508_v7 = vsel %vm380_vm2, %v1497_v16, 0.0  ;;  %v1641_v39 = vld [vmem:[#allocation10 + $0x98] sm:$0xff] }
 0x317   :  { %v1507_v4 = vadd.f32 %v1506_v38, %v1505_v50 }
 0x319   :  { %v1471_v59 = vpop.permute.xlu1 %1470  ;;  %v1509_v36 = vadd.f32 %v1508_v7, %v1507_v4  ;;  %v1696_v7 = vld [vmem:[#allocation11 + $0x8] sm:$0xff] }
 0x31a   :  { %v1476_v49 = vperm.slane %v1471_v59, %v2343_v40  ;;  %v1644_v59 = vld [vmem:[#allocation10 + $0xb0] sm:$0xff] }
 0x31c   :  { %v1498_v51 = vmul.f32 %v1476_v49, %v2259_v18  ;;  %v1492_v18 = vperm.slane %v1487_v63, %v2343_v40  ;;  %v1697_v63 = vld [vmem:[#allocation11 + $0x10] sm:$0xff] }
 0x31e   :  { %v1500_v40 = vmul.f32 %v1492_v18, %v2264_v21  ;;  %v1630_v21 = vld [vmem:[#allocation10 + $0x40] sm:$0xff] }
 0x320   :  { %v1514_v30 = vsel %vm380_vm2, %v1500_v40, 0.0 }
 0x33b   :  { %v880_v53 = vpop.f32.mrf.mxu0 }
 0x33c   :  { %v2656_v54 = vadd.f32 %v880_v53, %v737_v11  ;;  %v1622_v11 = vld [vmem:[#allocation10] sm:$0xff]  ;;  %v1571_v53 = vld [vmem:[%s2728_s7] sm:$0x3]  ;;  %s2117_s7 = smov [#allocation13]  }
 0x33d   :  { %v1573_v41 = vperm.slane %v1571_v53, 0  ;;  %v1574_v15 = vperm.slane %v1571_v53, 1  ;;  %s1728_s21 = sshll.u32 %s2117_s7, 4  ;;  %s1729_s21 = int_to_ptr.vmem [resolvable:$true] %s1728_s21 }
 0x33e   :  { %1779 = vmatmul.msk.f32.vlgmr.msra.gmra.mxu3 %vm186_vm0, %v2656_v54 }
 0x365   :  { %v1246_v48 = vpop.f32.mrf.mxu3 }
 0x366   :  { %1773 = vmatmul.msk.f32.vlgmr.msra.gmra.mxu0 %vm545_vm3, %v1246_v48  ;;  %v1639_v48 = vld [vmem:[#allocation10 + $0x88] sm:$0xff] }
 0x367   :  { %1531 = vmatpush.msra.mxu0 %v1834_v33  ;;  %v1637_v33 = vld [vmem:[#allocation10 + $0x78] sm:$0xff] }
 0x368   :  { %1654 = vmatpush.msrb.mxu1 %v1637_v33 }
 0x369   :  { %1532 = vmatpush.msra.mxu0 %v1835_v61  ;;  %v1510_v61 = vsel %vm380_vm2, %v1498_v51, 0.0 }
 0x36a   :  { %1655 = vmatpush.msrb.mxu1 %v1636_v9  ;;  %v1511_v23 = vadd.f32 %v1510_v61, %v1509_v36  ;;  %v1698_v9 = vld [vmem:[#allocation11 + $0x18] sm:$0xff]  ;;  %v1695_v61 = vld [vmem:[#allocation11] sm:$0xff] }
 0x36b   :  { %1533 = vmatpush.msra.mxu0 %v1839_v47  ;;  %v1499_v47 = vmul.f32 %v1484_v28, %v2261_v19  ;;  %1714 = vmatpush.msrb.mxu3 %v1698_v9 }
 0x36c   :  { %1656 = vmatpush.msrb.mxu1 %v1635_v17 }
 0x36d   :  { %1534 = vmatpush.msra.mxu0 %v1840_v3  ;;  %v1633_v3 = vld [vmem:[#allocation10 + $0x58] sm:$0xff]  ;;  %v1512_v19 = vsel %vm380_vm2, %v1499_v47, 0.0  ;;  %1715 = vmatpush.msrb.mxu3 %v1697_v63 }
 0x36e   :  { %1657 = vmatpush.msrb.mxu1 %v1634_v52  ;;  %v1513_v10 = vadd.f32 %v1512_v19, %v1511_v23 }
 0x36f   :  { %1716 = vmatpush.msrb.mxu3 %v1696_v7 }
 0x370   :  { %1658 = vmatpush.msrb.mxu1 %v1633_v3  ;;  %v1515_v24 = vadd.f32 %v1514_v30, %v1513_v10 }
 0x371   :  { %1717 = vmatpush.msrb.mxu3 %v1695_v61 }
 0x372   :  { %v1402_v27 = vpop.f32.mrf.mxu3  ;;  %1659 = vmatpush.msrb.mxu1 %v1632_v43 }
 0x373   :  { %1776 = vmatmul.msk.f32.vlgmr.msrb.gmra.mxu0 %vm545_vm3, %v1402_v27 }
 0x374   :  { %1612 = vmatpush.msrb.mxu0 %v1570_v57  ;;  %1660 = vmatpush.msrb.mxu1 %v1631_v14 }
 0x376   :  { %1613 = vmatpush.msrb.mxu0 %v1568_v60  ;;  %1661 = vmatpush.msrb.mxu1 %v1630_v21 }
 0x378   :  { %1614 = vmatpush.msrb.mxu0 %v1566_v26  ;;  %1662 = vmatpush.msrb.mxu1 %v1629_v5 }
 0x37a   :  { %1615 = vmatpush.msrb.mxu0 %v1564_v44  ;;  %1663 = vmatpush.msrb.mxu1 %v1628_v6 }
 0x37b   :  { %1777 = vmatmul.msk.f32.vlgmr.msra.gmra.mxu0 %vm186_vm0, %v1515_v24 }
 0x37c   :  { %1664 = vmatpush.msrb.mxu1 %v1627_v32 }
 0x37e   :  { %1665 = vmatpush.msrb.mxu1 %v1626_v34 }
 0x380   :  { %1666 = vmatpush.msrb.mxu1 %v1625_v2 }
 0x382   :  { %1667 = vmatpush.msrb.mxu1 %v1624_v35 }
 0x383   :  { %1780 = vmatmul.msk.f32.vlgmr.msrb.gmra.mxu0 %vm186_vm0, %v2656_v54 }
 0x384   :  { %1668 = vmatpush.msrb.mxu1 %v1623_v22 }
 0x386   :  { %1669 = vmatpush.msrb.mxu1 %v1622_v11 }
 0x38b   :  { %v1136_v58 = vpop.f32.mrf.mxu2 }
 0x38c   :  { %1774 = vmatmul.msk.f32.vlgmr.msra.gmra.mxu2 %vm545_vm3, %v1136_v58 }
 0x38d   :  { %1674 = vmatpush.msra.mxu2 %v1653_v45 }
 0x38f   :  { %1675 = vmatpush.msra.mxu2 %v1652_v0 }
 0x391   :  { %1676 = vmatpush.msra.mxu2 %v1651_v62 }
 0x393   :  { %1677 = vmatpush.msra.mxu2 %v1650_v1 }
 0x395   :  { %1678 = vmatpush.msra.mxu2 %v1649_v20 }
 0x397   :  { %1679 = vmatpush.msra.mxu2 %v1648_v29 }
 0x399   :  { %1680 = vmatpush.msra.mxu2 %v1647_v31 }
 0x39b   :  { %1681 = vmatpush.msra.mxu2 %v1646_v8 }
 0x39d   :  { %1682 = vmatpush.msra.mxu2 %v1645_v25 }
 0x39f   :  { %1683 = vmatpush.msra.mxu2 %v1644_v59 }
 0x3a1   :  { %1684 = vmatpush.msra.mxu2 %v1643_v42 }
 0x3a3   :  { %1685 = vmatpush.msra.mxu2 %v1642_v37 }
 0x3a5   :  { %1686 = vmatpush.msra.mxu2 %v1641_v39 }
 0x3a7   :  { %1687 = vmatpush.msra.mxu2 %v1640_v46 }
 0x3a9   :  { %1688 = vmatpush.msra.mxu2 %v1639_v48 }
 0x3ab   :  { %1689 = vmatpush.msra.mxu2 %v1638_v12 }
 0x3c1   :  { %v1597_v55 = vpop.f32.mrf.mxu3 }
 0x3c2   :  { %v1598_v54 = vadd.f32 %v1597_v55, %v1573_v41 }
 0x3c4   :  { %1891 = vtanh.f32 %v1598_v54 }
 0x3ca   :  { %v1892_v56 = vpop.eup %1891 }
 0x3cb   :  { %1670 = vmatmul.f32.vlgmr.msrb.gmra.mxu1 %v1892_v56 }
 0x3e3   :  { %v1269_v49 = vpop.f32.mrf.mxu0 }
 0x3f0   :  { %v1425_v13 = vpop.f32.mrf.mxu0 }
 0x3f8   :  { %v1536_v38 = vpop.f32.mrf.mxu0 }
 0x3f9   :  { %1778 = vmatmul.msk.f32.vlgmr.msrb.gmra.mxu2 %vm545_vm3, %v1536_v38 }
 0x400   :  { %v1617_v50 = vpop.f32.mrf.mxu0 }
 0x401   :  { %v1618_v16 = vadd.f32 %v1617_v50, %v1574_v15 }
 0x403   :  { %1893 = vtanh.f32 %v1618_v16 }
 0x409   :  { %v1894_v51 = vpop.eup %1893 }
 0x40a   :  { %1690 = vmatmul.f32.vlgmr.msra.gmra.mxu2 %v1894_v51 }
 0x40f   :  { %v1292_v4 = vpop.f32.mrf.mxu2 }
 0x410   :  { %v1293_v28 = vadd.f32 %v1292_v4, %v1269_v49 }
 0x412   :  { %v1428_v33 = vadd.f32 %v1425_v13, %v1293_v28 }
 0x448   :  { %v1671_v18 = vpop.f32.mrf.mxu1 }
 0x47c   :  { %v1559_v17 = vpop.f32.mrf.mxu2 }
 0x47d   :  { %v1562_v36 = vadd.f32 %v1559_v17, %v1428_v33 }
 0x47f   :  { %1781 = vmatmul.msk.f32.vlgmr.msrb.gmra.mxu3 %vm186_vm0, %v1562_v36 }
 0x48d   :  { %v1691_v47 = vpop.f32.mrf.mxu2 }
 0x48e   :  { %v1692_v52 = vadd.f32 %v1691_v47, %v1671_v18 }
 0x490   :  { %1694 = vst [vmem:[#allocation13] sm:$0x3] %v1692_v52 }
 0x491   :  { %1733 = dma.vmem_to_hbm [thread:$0]  %s1729_s21, 32, %s1731_s25, [#allocation4]  }
 0x502   :  { %v1719_v23 = vpop.f32.mrf.mxu3 }
 0x503   :  { %1722 = vst [vmem:[#allocation14] sm:$0x3] %v1719_v23 }
 0x504   :  { %1744 = dma.vmem_to_hbm [thread:$0]  %s1740_s27, 32, %s1742_s28, [#allocation15]  }
 0x505   :  { %2095 = dma.done.wait [#allocation4], 32  }
 0x506   :  { %2096 = vsyncadd [#allocation4], 4294967264 }
 0x507   :  { %2097 = dma.done.wait [#allocation15], 32  }
 0x508   :  { %2098 = vsyncadd [#allocation15], 4294967264 }
 0x509   :  { %1753 = vsyncpa [#allocation3], 1 }
 0x50a   :  { %1754 = vsyncpa [#allocation6], 1 }
 0x50b   :  { %1755 = vsyncpa [#allocation9], 1 }
 0x50c   :  { %1756 = vsyncpa [#allocation12], 1 }
 0x50d   :  { %1757 = vsyncpa [#allocation4], 1 }
 0x50e   :  { %1758 = vsyncpa [#allocation15], 1 }

</bundles_post_ra>
